<compile_context>
chip_gen: v7x
topology: tpu7x:2x2x1
jax: 0.10.0
libtpu: 0.0.40
codegen_flags: <defaults>
</compile_context>

<pallas_src>
import functools

import jax
import jax.numpy as jnp
from jax.experimental import pallas as pl
from jax.experimental.pallas import tpu as pltpu


def _round_up(x, m):
    return ((x + m - 1) // m) * m


# ---------------------------------------------------------------------------
# Fused kernel: one grid step == block_B batch elements.
#   xe_ref   : (block_B, C, XL)   bf16  flattened zero-padded image + flat zero padding
#   wk_ref   : (OC, 9*C)          bf16  conv weight, taps folded into the K axis
#   cb_ref   : (OC, 1)            f32   conv bias (column -> broadcasts over lanes)
#   fcw_ref  : (OC*QP, NPAD)      bf16  FC weight flattened to match the in-kernel flatten
#   fcb_ref  : (1, NPAD)          f32   FC bias, lane-padded
#   feat_ref : (block_B, OC, QP)  f32   conv+ReLU on the padded grid (border / lane-pad
#                                       columns are junk; zero FC weight, sliced in wrapper)
#   logit_ref: (block_B, 1, NPAD) f32
# where QP = round_up((H+2)*(W+2), 128).
# ---------------------------------------------------------------------------
def _fused_classifier_kernel(xe_ref, wk_ref, cb_ref, fcw_ref, fcb_ref,
                             feat_ref, logit_ref, *, block_B, C, OC, H, W, QP, off0):
    Wp = W + 2
    # 3x3 tap offsets on the flattened padded grid, (kh, kw) raster order — must match
    # the (OC, 9*C) weight layout built in prepare_kernel_params.
    deltas = [(kh - 1) * Wp + (kw - 1) for kh in range(3) for kw in range(3)]

    wk = wk_ref[...]        # (OC, 9*C) bf16   (small; hoisted)
    cb = cb_ref[...]        # (OC, 1)   f32
    fcb = fcb_ref[...]      # (1, NPAD) f32

    for b in range(block_B):                      # static unroll over the batch block
        xb = xe_ref[b]                            # (C, XL) bf16

        # ---- Conv2d(3x3, pad=1): in-kernel im2col -> ONE K=9*C MXU matmul. ----
        # 9 static lane-slices (the realignment lands on XLU and hides under the matmul),
        # stacked along sublanes into the contraction axis.
        patches = [xb[:, off0 + d: off0 + d + QP] for d in deltas]   # 9 x (C, QP)
        rhs = jnp.concatenate(patches, axis=0)                       # (9*C, QP)
        acc = jnp.dot(wk, rhs, preferred_element_type=jnp.float32)   # (OC, QP) f32

        feat = jnp.maximum(acc + cb, 0.0)         # bias + ReLU in f32
        feat_ref[b] = feat                        # lane-dense, unmasked stores (QP % 128 == 0)

        # ---- Flatten + Linear as ONE K=OC*QP matmul (activations never leave VMEM). ----
        # Lane-aligned flatten: row o goes to lanes [o*QP, (o+1)*QP) (QP multiple of 128).
        flat = jnp.concatenate([feat[o:o + 1, :] for o in range(OC)], axis=1)  # (1, OC*QP)
        flat_bf = flat.astype(jnp.bfloat16)                                    # single cast
        logits = jnp.dot(flat_bf, fcw_ref[...],
                         preferred_element_type=jnp.float32) + fcb             # (1, NPAD)
        logit_ref[b] = logits


def _pick_block_b(B):
    """Batch-block size: amortize per-grid-step overhead, but keep >= 2 grid steps so
    v7x's two TensorCores can both get work (v5e/v6e have 1 TC, unaffected)."""
    if B <= 1:
        return 1
    return max(1, min(8, B // 2))


# ---------------------------------------------------------------------------
# Forward pass (same semantics as the PyTorch module: returns (logits, features)).
# ---------------------------------------------------------------------------
def classification_model_forward(x, kparams, *, num_classes, single_buffer_weights=True):
    """x: (B, C, H, W). Returns (logits (B, num_classes), features (B, OC, H, W))."""
    x = x.astype(jnp.float32)                 # x.type(self.input_type)
    B, C, H, W = x.shape
    wk = kparams["conv_w_taps"]               # (OC, 9*C)      bf16
    cb = kparams["conv_b_col"]                # (OC, 1)        f32
    fcw = kparams["fc_w_flat"]                # (OC*QP, NPAD)  bf16
    fcb = kparams["fc_b_pad"]                 # (1, NPAD)      f32
    OC = wk.shape[0]
    Hp, Wp = H + 2, W + 2
    Q = Hp * Wp
    QP = _round_up(Q, 128)                    # lane-dense feature width
    NPAD = fcb.shape[-1]
    off0 = Wp + 1                             # flat offset so every tap slice start >= 0
    XL = _round_up(QP + 2 * (Wp + 1), 128)    # flat image row length (128-aligned)
    assert fcw.shape[0] == OC * QP and num_classes <= NPAD

    block_B = _pick_block_b(B)
    B_pad = _round_up(B, block_B)

    # Cast to bf16 BEFORE padding; spatial pad, then flat+batch pad in a single jnp.pad
    # (XLA fuses this pad/reshape/pad chain into one pass over the tiny input).
    xp = jnp.pad(x.astype(jnp.bfloat16), ((0, 0), (0, 0), (1, 1), (1, 1)))   # (B,C,Hp,Wp)
    xe = jnp.pad(xp.reshape(B, C, Q),
                 ((0, B_pad - B), (0, 0), (off0, XL - Q - off0)))            # (B_pad,C,XL)

    # Weight inputs have constant index maps; single-buffer them to halve their VMEM.
    wmode = dict(pipeline_mode=pl.Buffered(1)) if single_buffer_weights else {}

    kernel = functools.partial(_fused_classifier_kernel, block_B=block_B, C=C, OC=OC,
                               H=H, W=W, QP=QP, off0=off0)
    feat_full, logits_pad = pl.pallas_call(
        kernel,
        out_shape=(jax.ShapeDtypeStruct((B_pad, OC, QP), jnp.float32),
                   jax.ShapeDtypeStruct((B_pad, 1, NPAD), jnp.float32)),
        grid=(B_pad // block_B,),
        in_specs=[
            pl.BlockSpec((block_B, C, XL), lambda i: (i, 0, 0)),               # images
            pl.BlockSpec((OC, wk.shape[1]), lambda i: (0, 0), **wmode),        # conv weight
            pl.BlockSpec((OC, 1), lambda i: (0, 0), **wmode),                  # conv bias
            pl.BlockSpec((OC * QP, NPAD), lambda i: (0, 0), **wmode),          # FC weight
            pl.BlockSpec((1, NPAD), lambda i: (0, 0), **wmode),                # FC bias
        ],
        out_specs=[
            pl.BlockSpec((block_B, OC, QP), lambda i: (i, 0, 0)),              # features
            pl.BlockSpec((block_B, 1, NPAD), lambda i: (i, 0, 0)),             # logits
        ],
        compiler_params=pltpu.CompilerParams(dimension_semantics=("parallel",)),
    )(xe, wk, cb, fcw, fcb)

    # One fused slice+reshape back to the module's NCHW feature map / logit width.
    features = feat_full[:B, :, :Q].reshape(B, OC, Hp, Wp)[:, :, 1:1 + H, 1:1 + W]
    logits = logits_pad[:B, 0, :num_classes]
    return logits, features


# ---------------------------------------------------------------------------
# One-time weight preparation (PyTorch layout -> kernel layout).  Done once, NOT per
# forward: removes fc_w.T / conv_w reshapes from the hot path.
# ---------------------------------------------------------------------------
def prepare_kernel_params(params, H, W, num_classes, n_pad=128):
    assert num_classes <= n_pad, "num_classes must fit in the padded class axis"
    conv_w = params["conv_w"]    # (OC, C, 3, 3)
    conv_b = params["conv_b"]    # (OC,)
    fc_w = params["fc_w"]        # (num_classes, OC*H*W)  (PyTorch Linear layout)
    fc_b = params["fc_b"]        # (num_classes,)
    OC, C = conv_w.shape[0], conv_w.shape[1]
    Hp, Wp = H + 2, W + 2
    Q = Hp * Wp
    QP = _round_up(Q, 128)

    # Conv taps folded into one (OC, 9*C) matrix, rows ordered (kh, kw, c) to match the
    # kernel's in-kernel im2col stacking order.
    wk = jnp.transpose(conv_w, (0, 2, 3, 1)).reshape(OC, 9 * C).astype(jnp.bfloat16)
    cb = conv_b.reshape(OC, 1).astype(jnp.float32)

    # Scatter the FC weight onto the zero-padded (Hp, Wp) grid (border rows and lane-pad
    # rows are zero so the junk conv outputs there contribute nothing), then flatten to
    # (OC*QP, NPAD) so the fused FC is one K=OC*QP matmul, and pad the class axis to 128.
    fc_w4 = fc_w.reshape(num_classes, OC, H, W)
    fc_w4 = jnp.pad(fc_w4, ((0, 0), (0, 0), (1, 1), (1, 1)))            # (NC, OC, Hp, Wp)
    fcw = fc_w4.reshape(num_classes, OC, Q)
    fcw = jnp.pad(fcw, ((0, 0), (0, 0), (0, QP - Q)))                   # (NC, OC, QP)
    fcw = jnp.transpose(fcw, (1, 2, 0)).reshape(OC * QP, num_classes)   # (OC*QP, NC)
    fcw = jnp.pad(fcw, ((0, 0), (0, n_pad - num_classes))).astype(jnp.bfloat16)
    fcb = jnp.pad(fc_b, (0, n_pad - num_classes)).reshape(1, n_pad).astype(jnp.float32)
    return {"conv_w_taps": wk, "conv_b_col": cb, "fc_w_flat": fcw, "fc_b_pad": fcb}


# ---------------------------------------------------------------------------
# Deterministic parameter init (synthetic; PyTorch-style layouts).
# ---------------------------------------------------------------------------
def init_params(key, in_channels, feat_channels, H, W, num_classes):
    k1, k2, k3, k4 = jax.random.split(key, 4)
    conv_bound = 1.0 / jnp.sqrt(in_channels * 9)
    fc_bound = 1.0 / jnp.sqrt(feat_channels * H * W)
    return {
        "conv_w": jax.random.uniform(k1, (feat_channels, in_channels, 3, 3),
                                     jnp.float32, -conv_bound, conv_bound),
        "conv_b": jax.random.uniform(k2, (feat_channels,), jnp.float32,
                                     -conv_bound, conv_bound),
        "fc_w": jax.random.uniform(k3, (num_classes, feat_channels * H * W),
                                   jnp.float32, -fc_bound, fc_bound),
        "fc_b": jax.random.uniform(k4, (num_classes,), jnp.float32,
                                   -fc_bound, fc_bound),
    }


if __name__ == "__main__":
    B, C, H, W = 2, 4, 16, 16
    FEAT_C, NUM_CLASSES = 8, 10

    key = jax.random.PRNGKey(0)
    kx, kp = jax.random.split(key)
    x = jax.random.normal(kx, (B, C, H, W), jnp.float32)
    params = init_params(kp, C, FEAT_C, H, W, NUM_CLASSES)
    kparams = prepare_kernel_params(params, H, W, NUM_CLASSES)

    def make_fwd(single_buffer_weights):
        return jax.jit(functools.partial(classification_model_forward,
                                         num_classes=NUM_CLASSES,
                                         single_buffer_weights=single_buffer_weights))

    try:
        fwd = make_fwd(True)                       # single-buffered constant weights
        logits, features = fwd(x, kparams)
        jax.block_until_ready((logits, features))
    except Exception:
        # Buffered(1) single-buffering is an optional optimization; fall back to the
        # default double-buffered pipeline if this build rejects it.
        fwd = make_fwd(False)
        logits, features = fwd(x, kparams)
        jax.block_until_ready((logits, features))

    assert logits.shape == (B, NUM_CLASSES)
    assert features.shape == (B, FEAT_C, H, W)

    # --- bf16-consistent reference (kernel uses bf16 MXU operands, f32 accumulation) ---
    def q(a):
        return a.astype(jnp.bfloat16).astype(jnp.float32)

    feat_ref = jax.lax.conv_general_dilated(
        q(x), q(params["conv_w"]), window_strides=(1, 1), padding="SAME",
        dimension_numbers=("NCHW", "OIHW", "NCHW"),
    ) + params["conv_b"][None, :, None, None]
    feat_ref = jnp.maximum(feat_ref, 0.0)
    logits_ref = q(feat_ref).reshape(B, -1) @ q(params["fc_w"]).T + params["fc_b"]

    assert jnp.allclose(features, feat_ref, atol=1e-3), "feature mismatch (bf16 ref)"
    assert jnp.allclose(logits, logits_ref, atol=1e-2), "logit mismatch (bf16 ref)"

    # --- loose sanity check against the pure-f32 PyTorch-equivalent reference ---
    feat_f32 = jax.lax.conv_general_dilated(
        x, params["conv_w"], window_strides=(1, 1), padding="SAME",
        dimension_numbers=("NCHW", "OIHW", "NCHW"),
    ) + params["conv_b"][None, :, None, None]
    feat_f32 = jnp.maximum(feat_f32, 0.0)
    logits_f32 = feat_f32.reshape(B, -1) @ params["fc_w"].T + params["fc_b"]
    assert jnp.allclose(features, feat_f32, atol=5e-2), "feature mismatch (f32 ref)"
    assert jnp.allclose(logits, logits_f32, atol=5e-2), "logit mismatch (f32 ref)"

    print("KERNEL_OK")
</pallas_src>

<mosaic_0001>
module attributes {stable_mosaic.version = 11 : i64} {
  func.func @_fused_classifier_kernel(%arg0: i32, %arg1: memref<1x4x512xbf16, #tpu.memory_space<vmem>>, %arg2: memref<8x36xbf16, #tpu.memory_space<vmem>>, %arg3: memref<8x1xf32, #tpu.memory_space<vmem>>, %arg4: memref<3072x128xbf16, #tpu.memory_space<vmem>>, %arg5: memref<1x128xf32, #tpu.memory_space<vmem>>, %arg6: memref<1x8x384xf32, #tpu.memory_space<vmem>>, %arg7: memref<1x1x128xf32, #tpu.memory_space<vmem>>) attributes {dimension_semantics = [#tpu.dimension_semantics<parallel>], iteration_bounds = array<i64: 2>, scalar_prefetch = 0 : i64, scratch_operands = 0 : i64, tpu.core_type = #tpu.core_type<tc>, window_params = [{transform_indices = @transform_0, window_bounds = array<i64: 1, 4, 512>}, {pipeline_mode = #tpu.pipeline_mode<synchronous>, transform_indices = @transform_1, window_bounds = array<i64: 8, 36>}, {pipeline_mode = #tpu.pipeline_mode<synchronous>, transform_indices = @transform_2, window_bounds = array<i64: 8, 1>}, {pipeline_mode = #tpu.pipeline_mode<synchronous>, transform_indices = @transform_3, window_bounds = array<i64: 3072, 128>}, {pipeline_mode = #tpu.pipeline_mode<synchronous>, transform_indices = @transform_4, window_bounds = array<i64: 1, 128>}, {transform_indices = @transform_5, window_bounds = array<i64: 1, 8, 384>}, {transform_indices = @transform_6, window_bounds = array<i64: 1, 1, 128>}]} {
    %c0 = arith.constant 0 : index
    %c0_0 = arith.constant 0 : index
    %0 = vector.load %arg2[%c0, %c0_0] : memref<8x36xbf16, #tpu.memory_space<vmem>>, vector<8x36xbf16>
    %c0_1 = arith.constant 0 : index
    %c0_2 = arith.constant 0 : index
    %1 = vector.load %arg3[%c0_1, %c0_2] : memref<8x1xf32, #tpu.memory_space<vmem>>, vector<8x1xf32>
    %c0_3 = arith.constant 0 : index
    %c0_4 = arith.constant 0 : index
    %2 = vector.load %arg5[%c0_3, %c0_4] : memref<1x128xf32, #tpu.memory_space<vmem>>, vector<1x128xf32>
    %c0_5 = arith.constant 0 : index
    %c0_6 = arith.constant 0 : index
    %c0_7 = arith.constant 0 : index
    %3 = vector.load %arg1[%c0_5, %c0_6, %c0_7] : memref<1x4x512xbf16, #tpu.memory_space<vmem>>, vector<1x4x512xbf16>
    %4 = vector.shape_cast %3 : vector<1x4x512xbf16> to vector<4x512xbf16>
    %5 = vector.extract_strided_slice %4 {offsets = [0, 0], sizes = [4, 384], strides = [1, 1]} : vector<4x512xbf16> to vector<4x384xbf16>
    %6 = vector.extract_strided_slice %4 {offsets = [0, 1], sizes = [4, 384], strides = [1, 1]} : vector<4x512xbf16> to vector<4x384xbf16>
    %7 = vector.extract_strided_slice %4 {offsets = [0, 2], sizes = [4, 384], strides = [1, 1]} : vector<4x512xbf16> to vector<4x384xbf16>
    %8 = vector.extract_strided_slice %4 {offsets = [0, 18], sizes = [4, 384], strides = [1, 1]} : vector<4x512xbf16> to vector<4x384xbf16>
    %9 = vector.extract_strided_slice %4 {offsets = [0, 19], sizes = [4, 384], strides = [1, 1]} : vector<4x512xbf16> to vector<4x384xbf16>
    %10 = vector.extract_strided_slice %4 {offsets = [0, 20], sizes = [4, 384], strides = [1, 1]} : vector<4x512xbf16> to vector<4x384xbf16>
    %11 = vector.extract_strided_slice %4 {offsets = [0, 36], sizes = [4, 384], strides = [1, 1]} : vector<4x512xbf16> to vector<4x384xbf16>
    %12 = vector.extract_strided_slice %4 {offsets = [0, 37], sizes = [4, 384], strides = [1, 1]} : vector<4x512xbf16> to vector<4x384xbf16>
    %13 = vector.extract_strided_slice %4 {offsets = [0, 38], sizes = [4, 384], strides = [1, 1]} : vector<4x512xbf16> to vector<4x384xbf16>
    %14 = tpu.concatenate %5, %6, %7, %8, %9, %10, %11, %12, %13 in 0 : vector<4x384xbf16>, vector<4x384xbf16>, vector<4x384xbf16>, vector<4x384xbf16>, vector<4x384xbf16>, vector<4x384xbf16>, vector<4x384xbf16>, vector<4x384xbf16>, vector<4x384xbf16> -> vector<36x384xbf16>
    %cst = arith.constant dense<0.000000e+00> : vector<8x384xf32>
    %15 = tpu.matmul %0, %14, %cst {dimension_numbers = #tpu.dot_dimension_numbers<[1], [0], [0], [1], [0, 0, 1, 1], [], []>} : vector<8x36xbf16>, vector<36x384xbf16>, vector<8x384xf32> -> vector<8x384xf32>
    %16 = vector.broadcast %1 : vector<8x1xf32> to vector<8x384xf32>
    %17 = arith.addf %15, %16 : vector<8x384xf32>
    %cst_8 = arith.constant 0.000000e+00 : f32
    %18 = vector.broadcast %cst_8 : f32 to vector<8x384xf32>
    %19 = arith.maximumf %17, %18 : vector<8x384xf32>
    %c0_9 = arith.constant 0 : index
    %c0_10 = arith.constant 0 : index
    %c0_11 = arith.constant 0 : index
    %20 = vector.load %arg6[%c0_9, %c0_10, %c0_11] : memref<1x8x384xf32, #tpu.memory_space<vmem>>, vector<1x8x384xf32>
    %21 = vector.shape_cast %20 : vector<1x8x384xf32> to vector<8x384xf32>
    %22 = vector.shape_cast %19 : vector<8x384xf32> to vector<1x8x384xf32>
    tpu.vector_store %arg6[%c0_9, %c0_10, %c0_11], %22 {strides = array<i32>} : memref<1x8x384xf32, #tpu.memory_space<vmem>>, vector<1x8x384xf32>,
    %23 = vector.extract_strided_slice %19 {offsets = [0, 0], sizes = [1, 384], strides = [1, 1]} : vector<8x384xf32> to vector<1x384xf32>
    %24 = vector.extract_strided_slice %19 {offsets = [1, 0], sizes = [1, 384], strides = [1, 1]} : vector<8x384xf32> to vector<1x384xf32>
    %25 = vector.extract_strided_slice %19 {offsets = [2, 0], sizes = [1, 384], strides = [1, 1]} : vector<8x384xf32> to vector<1x384xf32>
    %26 = vector.extract_strided_slice %19 {offsets = [3, 0], sizes = [1, 384], strides = [1, 1]} : vector<8x384xf32> to vector<1x384xf32>
    %27 = vector.extract_strided_slice %19 {offsets = [4, 0], sizes = [1, 384], strides = [1, 1]} : vector<8x384xf32> to vector<1x384xf32>
    %28 = vector.extract_strided_slice %19 {offsets = [5, 0], sizes = [1, 384], strides = [1, 1]} : vector<8x384xf32> to vector<1x384xf32>
    %29 = vector.extract_strided_slice %19 {offsets = [6, 0], sizes = [1, 384], strides = [1, 1]} : vector<8x384xf32> to vector<1x384xf32>
    %30 = vector.extract_strided_slice %19 {offsets = [7, 0], sizes = [1, 384], strides = [1, 1]} : vector<8x384xf32> to vector<1x384xf32>
    %31 = tpu.concatenate %23, %24, %25, %26, %27, %28, %29, %30 in 1 : vector<1x384xf32>, vector<1x384xf32>, vector<1x384xf32>, vector<1x384xf32>, vector<1x384xf32>, vector<1x384xf32>, vector<1x384xf32>, vector<1x384xf32> -> vector<1x3072xf32>
    %32 = arith.truncf %31 : vector<1x3072xf32> to vector<1x3072xbf16>
    %c0_12 = arith.constant 0 : index
    %c0_13 = arith.constant 0 : index
    %33 = vector.load %arg4[%c0_12, %c0_13] : memref<3072x128xbf16, #tpu.memory_space<vmem>>, vector<3072x128xbf16>
    %cst_14 = arith.constant dense<0.000000e+00> : vector<1x128xf32>
    %34 = tpu.matmul %32, %33, %cst_14 {dimension_numbers = #tpu.dot_dimension_numbers<[1], [0], [0], [1], [0, 0, 1, 1], [], []>} : vector<1x3072xbf16>, vector<3072x128xbf16>, vector<1x128xf32> -> vector<1x128xf32>
    %35 = arith.addf %34, %2 : vector<1x128xf32>
    %c0_15 = arith.constant 0 : index
    %c0_16 = arith.constant 0 : index
    %c0_17 = arith.constant 0 : index
    %36 = vector.load %arg7[%c0_15, %c0_16, %c0_17] : memref<1x1x128xf32, #tpu.memory_space<vmem>>, vector<1x1x128xf32>
    %37 = vector.shape_cast %36 : vector<1x1x128xf32> to vector<1x128xf32>
    %38 = vector.shape_cast %35 : vector<1x128xf32> to vector<1x1x128xf32>
    tpu.vector_store %arg7[%c0_15, %c0_16, %c0_17], %38 {strides = array<i32>} : memref<1x1x128xf32, #tpu.memory_space<vmem>>, vector<1x1x128xf32>,
    return
  }
  func.func @transform_0(%arg0: i32) -> (i32, i32, i32) {
    %c0_i32 = arith.constant 0 : i32
    %c0_i32_0 = arith.constant 0 : i32
    %c0_i32_1 = arith.constant 0 : i32
    return %arg0, %c0_i32, %c0_i32_0 : i32, i32, i32
  }
  func.func @transform_1(%arg0: i32) -> (i32, i32) {
    %c0_i32 = arith.constant 0 : i32
    %c0_i32_0 = arith.constant 0 : i32
    %c0_i32_1 = arith.constant 0 : i32
    return %c0_i32, %c0_i32_0 : i32, i32
  }
  func.func @transform_2(%arg0: i32) -> (i32, i32) {
    %c0_i32 = arith.constant 0 : i32
    %c0_i32_0 = arith.constant 0 : i32
    %c0_i32_1 = arith.constant 0 : i32
    return %c0_i32, %c0_i32_0 : i32, i32
  }
  func.func @transform_3(%arg0: i32) -> (i32, i32) {
    %c0_i32 = arith.constant 0 : i32
    %c0_i32_0 = arith.constant 0 : i32
    %c0_i32_1 = arith.constant 0 : i32
    return %c0_i32, %c0_i32_0 : i32, i32
  }
  func.func @transform_4(%arg0: i32) -> (i32, i32) {
    %c0_i32 = arith.constant 0 : i32
    %c0_i32_0 = arith.constant 0 : i32
    %c0_i32_1 = arith.constant 0 : i32
    return %c0_i32, %c0_i32_0 : i32, i32
  }
  func.func @transform_5(%arg0: i32) -> (i32, i32, i32) {
    %c0_i32 = arith.constant 0 : i32
    %c0_i32_0 = arith.constant 0 : i32
    %c0_i32_1 = arith.constant 0 : i32
    return %arg0, %c0_i32, %c0_i32_0 : i32, i32, i32
  }
  func.func @transform_6(%arg0: i32) -> (i32, i32, i32) {
    %c0_i32 = arith.constant 0 : i32
    %c0_i32_0 = arith.constant 0 : i32
    %c0_i32_1 = arith.constant 0 : i32
    return %arg0, %c0_i32, %c0_i32_0 : i32, i32, i32
  }
}

module attributes {stable_mosaic.version = 11 : i64} {
  func.func @_fused_classifier_kernel(%arg0: i32, %arg1: memref<1x4x512xbf16, #tpu.memory_space<vmem>>, %arg2: memref<8x36xbf16, #tpu.memory_space<vmem>>, %arg3: memref<8x1xf32, #tpu.memory_space<vmem>>, %arg4: memref<3072x128xbf16, #tpu.memory_space<vmem>>, %arg5: memref<1x128xf32, #tpu.memory_space<vmem>>, %arg6: memref<1x8x384xf32, #tpu.memory_space<vmem>>, %arg7: memref<1x1x128xf32, #tpu.memory_space<vmem>>) attributes {dimension_semantics = [#tpu.dimension_semantics<parallel>], iteration_bounds = array<i64: 2>, scalar_prefetch = 0 : i64, scratch_operands = 0 : i64, tpu.core_type = #tpu.core_type<tc>, window_params = [{transform_indices = @transform_0, window_bounds = array<i64: 1, 4, 512>}, {pipeline_mode = #tpu.pipeline_mode<synchronous>, transform_indices = @transform_1, window_bounds = array<i64: 8, 36>}, {pipeline_mode = #tpu.pipeline_mode<synchronous>, transform_indices = @transform_2, window_bounds = array<i64: 8, 1>}, {pipeline_mode = #tpu.pipeline_mode<synchronous>, transform_indices = @transform_3, window_bounds = array<i64: 3072, 128>}, {pipeline_mode = #tpu.pipeline_mode<synchronous>, transform_indices = @transform_4, window_bounds = array<i64: 1, 128>}, {transform_indices = @transform_5, window_bounds = array<i64: 1, 8, 384>}, {transform_indices = @transform_6, window_bounds = array<i64: 1, 1, 128>}]} {
    %c0 = arith.constant 0 : index
    %c0_0 = arith.constant 0 : index
    %0 = vector.load %arg2[%c0, %c0_0] : memref<8x36xbf16, #tpu.memory_space<vmem>>, vector<8x36xbf16>
    %c0_1 = arith.constant 0 : index
    %c0_2 = arith.constant 0 : index
    %1 = vector.load %arg3[%c0_1, %c0_2] : memref<8x1xf32, #tpu.memory_space<vmem>>, vector<8x1xf32>
    %c0_3 = arith.constant 0 : index
    %c0_4 = arith.constant 0 : index
    %2 = vector.load %arg5[%c0_3, %c0_4] : memref<1x128xf32, #tpu.memory_space<vmem>>, vector<1x128xf32>
    %c0_5 = arith.constant 0 : index
    %c0_6 = arith.constant 0 : index
    %c0_7 = arith.constant 0 : index
    %3 = vector.load %arg1[%c0_5, %c0_6, %c0_7] : memref<1x4x512xbf16, #tpu.memory_space<vmem>>, vector<1x4x512xbf16>
    %4 = vector.shape_cast %3 : vector<1x4x512xbf16> to vector<4x512xbf16>
    %5 = vector.extract_strided_slice %4 {offsets = [0, 0], sizes = [4, 384], strides = [1, 1]} : vector<4x512xbf16> to vector<4x384xbf16>
    %6 = vector.extract_strided_slice %4 {offsets = [0, 1], sizes = [4, 384], strides = [1, 1]} : vector<4x512xbf16> to vector<4x384xbf16>
    %7 = vector.extract_strided_slice %4 {offsets = [0, 2], sizes = [4, 384], strides = [1, 1]} : vector<4x512xbf16> to vector<4x384xbf16>
    %8 = vector.extract_strided_slice %4 {offsets = [0, 18], sizes = [4, 384], strides = [1, 1]} : vector<4x512xbf16> to vector<4x384xbf16>
    %9 = vector.extract_strided_slice %4 {offsets = [0, 19], sizes = [4, 384], strides = [1, 1]} : vector<4x512xbf16> to vector<4x384xbf16>
    %10 = vector.extract_strided_slice %4 {offsets = [0, 20], sizes = [4, 384], strides = [1, 1]} : vector<4x512xbf16> to vector<4x384xbf16>
    %11 = vector.extract_strided_slice %4 {offsets = [0, 36], sizes = [4, 384], strides = [1, 1]} : vector<4x512xbf16> to vector<4x384xbf16>
    %12 = vector.extract_strided_slice %4 {offsets = [0, 37], sizes = [4, 384], strides = [1, 1]} : vector<4x512xbf16> to vector<4x384xbf16>
    %13 = vector.extract_strided_slice %4 {offsets = [0, 38], sizes = [4, 384], strides = [1, 1]} : vector<4x512xbf16> to vector<4x384xbf16>
    %14 = tpu.concatenate %5, %6, %7, %8, %9, %10, %11, %12, %13 in 0 : vector<4x384xbf16>, vector<4x384xbf16>, vector<4x384xbf16>, vector<4x384xbf16>, vector<4x384xbf16>, vector<4x384xbf16>, vector<4x384xbf16>, vector<4x384xbf16>, vector<4x384xbf16> -> vector<36x384xbf16>
    %cst = arith.constant dense<0.000000e+00> : vector<8x384xf32>
    %15 = tpu.matmul %0, %14, %cst {dimension_numbers = #tpu.dot_dimension_numbers<[1], [0], [0], [1], [0, 0, 1, 1], [], []>} : vector<8x36xbf16>, vector<36x384xbf16>, vector<8x384xf32> -> vector<8x384xf32>
    %16 = vector.broadcast %1 : vector<8x1xf32> to vector<8x384xf32>
    %17 = arith.addf %15, %16 : vector<8x384xf32>
    %cst_8 = arith.constant 0.000000e+00 : f32
    %18 = vector.broadcast %cst_8 : f32 to vector<8x384xf32>
    %19 = arith.maximumf %17, %18 : vector<8x384xf32>
    %c0_9 = arith.constant 0 : index
    %c0_10 = arith.constant 0 : index
    %c0_11 = arith.constant 0 : index
    %20 = vector.load %arg6[%c0_9, %c0_10, %c0_11] : memref<1x8x384xf32, #tpu.memory_space<vmem>>, vector<1x8x384xf32>
    %21 = vector.shape_cast %20 : vector<1x8x384xf32> to vector<8x384xf32>
    %22 = vector.shape_cast %19 : vector<8x384xf32> to vector<1x8x384xf32>
    tpu.vector_store %arg6[%c0_9, %c0_10, %c0_11], %22 {strides = array<i32>} : memref<1x8x384xf32, #tpu.memory_space<vmem>>, vector<1x8x384xf32>,
    %23 = vector.extract_strided_slice %19 {offsets = [0, 0], sizes = [1, 384], strides = [1, 1]} : vector<8x384xf32> to vector<1x384xf32>
    %24 = vector.extract_strided_slice %19 {offsets = [1, 0], sizes = [1, 384], strides = [1, 1]} : vector<8x384xf32> to vector<1x384xf32>
    %25 = vector.extract_strided_slice %19 {offsets = [2, 0], sizes = [1, 384], strides = [1, 1]} : vector<8x384xf32> to vector<1x384xf32>
    %26 = vector.extract_strided_slice %19 {offsets = [3, 0], sizes = [1, 384], strides = [1, 1]} : vector<8x384xf32> to vector<1x384xf32>
    %27 = vector.extract_strided_slice %19 {offsets = [4, 0], sizes = [1, 384], strides = [1, 1]} : vector<8x384xf32> to vector<1x384xf32>
    %28 = vector.extract_strided_slice %19 {offsets = [5, 0], sizes = [1, 384], strides = [1, 1]} : vector<8x384xf32> to vector<1x384xf32>
    %29 = vector.extract_strided_slice %19 {offsets = [6, 0], sizes = [1, 384], strides = [1, 1]} : vector<8x384xf32> to vector<1x384xf32>
    %30 = vector.extract_strided_slice %19 {offsets = [7, 0], sizes = [1, 384], strides = [1, 1]} : vector<8x384xf32> to vector<1x384xf32>
    %31 = tpu.concatenate %23, %24, %25, %26, %27, %28, %29, %30 in 1 : vector<1x384xf32>, vector<1x384xf32>, vector<1x384xf32>, vector<1x384xf32>, vector<1x384xf32>, vector<1x384xf32>, vector<1x384xf32>, vector<1x384xf32> -> vector<1x3072xf32>
    %32 = arith.truncf %31 : vector<1x3072xf32> to vector<1x3072xbf16>
    %c0_12 = arith.constant 0 : index
    %c0_13 = arith.constant 0 : index
    %33 = vector.load %arg4[%c0_12, %c0_13] : memref<3072x128xbf16, #tpu.memory_space<vmem>>, vector<3072x128xbf16>
    %cst_14 = arith.constant dense<0.000000e+00> : vector<1x128xf32>
    %34 = tpu.matmul %32, %33, %cst_14 {dimension_numbers = #tpu.dot_dimension_numbers<[1], [0], [0], [1], [0, 0, 1, 1], [], []>} : vector<1x3072xbf16>, vector<3072x128xbf16>, vector<1x128xf32> -> vector<1x128xf32>
    %35 = arith.addf %34, %2 : vector<1x128xf32>
    %c0_15 = arith.constant 0 : index
    %c0_16 = arith.constant 0 : index
    %c0_17 = arith.constant 0 : index
    %36 = vector.load %arg7[%c0_15, %c0_16, %c0_17] : memref<1x1x128xf32, #tpu.memory_space<vmem>>, vector<1x1x128xf32>
    %37 = vector.shape_cast %36 : vector<1x1x128xf32> to vector<1x128xf32>
    %38 = vector.shape_cast %35 : vector<1x128xf32> to vector<1x1x128xf32>
    tpu.vector_store %arg7[%c0_15, %c0_16, %c0_17], %38 {strides = array<i32>} : memref<1x1x128xf32, #tpu.memory_space<vmem>>, vector<1x1x128xf32>,
    return
  }
  func.func @transform_0(%arg0: i32) -> (i32, i32, i32) {
    %c0_i32 = arith.constant 0 : i32
    %c0_i32_0 = arith.constant 0 : i32
    %c0_i32_1 = arith.constant 0 : i32
    return %arg0, %c0_i32, %c0_i32_0 : i32, i32, i32
  }
  func.func @transform_1(%arg0: i32) -> (i32, i32) {
    %c0_i32 = arith.constant 0 : i32
    %c0_i32_0 = arith.constant 0 : i32
    %c0_i32_1 = arith.constant 0 : i32
    return %c0_i32, %c0_i32_0 : i32, i32
  }
  func.func @transform_2(%arg0: i32) -> (i32, i32) {
    %c0_i32 = arith.constant 0 : i32
    %c0_i32_0 = arith.constant 0 : i32
    %c0_i32_1 = arith.constant 0 : i32
    return %c0_i32, %c0_i32_0 : i32, i32
  }
  func.func @transform_3(%arg0: i32) -> (i32, i32) {
    %c0_i32 = arith.constant 0 : i32
    %c0_i32_0 = arith.constant 0 : i32
    %c0_i32_1 = arith.constant 0 : i32
    return %c0_i32, %c0_i32_0 : i32, i32
  }
  func.func @transform_4(%arg0: i32) -> (i32, i32) {
    %c0_i32 = arith.constant 0 : i32
    %c0_i32_0 = arith.constant 0 : i32
    %c0_i32_1 = arith.constant 0 : i32
    return %c0_i32, %c0_i32_0 : i32, i32
  }
  func.func @transform_5(%arg0: i32) -> (i32, i32, i32) {
    %c0_i32 = arith.constant 0 : i32
    %c0_i32_0 = arith.constant 0 : i32
    %c0_i32_1 = arith.constant 0 : i32
    return %arg0, %c0_i32, %c0_i32_0 : i32, i32, i32
  }
  func.func @transform_6(%arg0: i32) -> (i32, i32, i32) {
    %c0_i32 = arith.constant 0 : i32
    %c0_i32_0 = arith.constant 0 : i32
    %c0_i32_1 = arith.constant 0 : i32
    return %arg0, %c0_i32, %c0_i32_0 : i32, i32, i32
  }
}

</mosaic_0001>

<bundles_post_ra>
// kernel: classification_model_forward.1
= control target key start
LH: loop header
LB: loop body
LE: loop exit
PB: predicated region body
PF: predicated region fallthrough
CT: control target
= control target key end

     0   :  { %12 = vsyncpa [#allocation3], 0  ;;  %s3923_s0 = inlined_call_operand.vmem [shape: bf16[2,4,512], index: 0, kind: input, shape index: {}]   ;;  %s3924_s1 = inlined_call_operand.vmem [shape: bf16[8,36], index: 1, kind: input, shape index: {}]   ;;  %s3925_s2 = inlined_call_operand.vmem [shape: f32[8,1], index: 2, kind: input, shape index: {}]   ;;  %s3926_s3 = inlined_call_operand.hbm [shape: bf16[3072,128], index: 3, kind: input, shape index: {}]   ;;  %s3927_s4 = inlined_call_operand.vmem [shape: f32[1,128], index: 4, kind: input, shape index: {}]   ;;  %s3928_s5 = inlined_call_operand.vmem [shape: f32[2,8,384], index: 5, kind: output, shape index: {0}]   ;;  %s3929_s6 = inlined_call_operand.hbm [shape: f32[2,1,128], index: 6, kind: output, shape index: {1}]  }
   0x1   :  { %13 = vsyncpa [#allocation4], 0 }
   0x2   :  { %15 = vsyncpa [#allocation4 + $0x1], 0  ;;  %s3656_s21 = smov 0   ;;  %s3658_s22 = smov 0  }
   0x3   :  { %s3660_s23 = smov 0   ;;  %s3662_s24 = smov 0  }
   0x4 LB: > { %s3677_s25 = sadd.s32 4294967295, %s3603_s24   ;;  %s2763_s26 = sadd.s32 4294967294, %s3603_s24   ;;  %s3603_s24 = sphi %s3662_s24, %s3945_s24   ;;  %s3599_s23 = sphi %s3660_s23, %s3944_s23   ;;  %s3595_s22 = sphi %s3658_s22, %s3943_s22   ;;  %s3591_s21 = sphi %s3656_s21, %s3942_s21  }
   0x5   : > { %s3681_s27 = sadd.s32 1, %s3603_s24   ;;  %s164_s28 = sadd.s32 1, %s3599_s23 }
   0x6   : > { %s161_s29 = ssub.s32 %s3603_s24, %s3681_s27  ;;  %p174_p0 = scmp.ne.s32.totalorder %s3599_s23, %s3595_s22 }
   0x7   : > { %p162_p1 = scmp.eq.s32.totalorder %s161_s29, 0  ;;  %p175_p2 = scmp.eq.s32.totalorder %s3677_s25, 1 }
   0x8   : > { %p180_p3 = scmp.ne.s32.totalorder %s3595_s22, %s3591_s21  ;;  %p181_p4 = scmp.eq.s32.totalorder %s2763_s26, 1 }
   0x9   : > { %s3692_s30 = scalar_select %p162_p1, %s3599_s23, %s164_s28  }
   0xa   : > { %p3694_p5 = por %p175_p2, %p174_p0  ;;  %p3698_p6 = por %p181_p4, %p180_p3 }
   0xb   : > { %p2764_p7 = scmp.ge.s32.totalorder %s3603_s24, 1  ;;  %p188_p8 = scmp.lt.s32.totalorder %s3603_s24, 3 }
   0xc   : > { %s3933_s7 = scalar_select %p3694_p5, 1, 0 }
   0xd   : > { %s3934_s8 = scalar_select %p3698_p6, 1, 0 }
   0xe   : > { %p3930_p9 = scmp.eq.s32.totalorder %s3677_s25, 0  ;;  %p3705_p10 = pnand %p2764_p7, %p188_p8 }
   0xf   : > { %s3605_s10 = smov [#allocation2]   ;;  %s3509_s15 = scalar_lea.hbm %s3926_s3, 24576 }
  0x10   : > { %s3935_s9 = scalar_select %p3705_p10, 1, 0 }
  0x11   : > { %s206_s11 = sshll.u32 %s3605_s10, 4  ;;  %p3256_p11 = pneg %p3705_p10  ;;  %s207_s11 = int_to_ptr.vmem [resolvable:$true] %s206_s11 }
  0x12   : > { %p3510_p13 = scmp.ne.s32.totalorder %s3926_s3, %s3509_s15  ;;  %p3516_p3 = scmp.lt.u32.totalorder %s3509_s15, %s3926_s3 }
  0x13   : > { %p3713_p12 = pnand %p3930_p9, %p3256_p11 }
  0x15   : > { %p3511_p0 = pneg %p3713_p12 }
  0x17   : > { %p3512_p1 = pnand %p3511_p0, %p3510_p13 }
  0x19   : > { %p3513_p2 = pneg %p3512_p1 }
  0x1b   : > { %p3518_p4 = pnand %p3516_p3, %p3513_p2 }
  0x1d   : > { %3521 = shalt.err (!%p3518_p4)
}
  0x1e   : > { %s3522_s20 = scalar_lea.vmem %s207_s11, 24576  ;;  %p3530_p9 = scmp.lt.s32.totalorder %s207_s11, %s207_s11 }
  0x1f   : > { %p3523_p7 = scmp.ne.s32.totalorder %s207_s11, %s3522_s20  ;;  %p3531_p6 = scmp.lt.s32.totalorder %s3522_s20, %s3522_s20 }
  0x21   : > { %p3525_p8 = pnand %p3523_p7, %p3511_p0  ;;  %p3532_p5 = por %p3531_p6, %p3530_p9 }
  0x23   : > { %p3526_p11 = pneg %p3525_p8 }
  0x25   : > { %p3533_p10 = pnand %p3532_p5, %p3526_p11 }
  0x27   : > { %3536 = shalt.err (!%p3533_p10)
}
  0x28   : > { %s3606_s26 = smov 64   ;;  %s3607_s28 = smov 4  }
  0x29   : > { %3259 = dma.hbm_to_vmem [thread:$0]  (!%p3713_p12), %s3926_s3, 24576, %s207_s11, [#allocation3], %s3606_s26, %s3606_s26, %s3607_s28  }
  0x2a   : > { %p3937_p13 = scmp.ne.s32.totalorder %s3935_s9, 0 }
  0x2b   : > { %p3938_p1 = scmp.eq.s32.totalorder (!%p3937_p13), %s3677_s25, 0 }
  0x2c   : > { %233 = sbr.rel (%p3937_p13) target bundleno = 854 (0x356), region = 40 }
  0x33   : > { %3582 = dma.done.wait (%p3938_p1), [#allocation3], 24576   ;;  %p3939_p0 = pmov %p3938_p1 }
  0x34   : > { %p267_p5 = scmp.lt.s32.totalorder %s3677_s25, 1  ;;  %v287_v0 = vlaneseq  ;;  %v3608_v1 = vmov 1983009808   ;;  %s3609_s15 = smov 126   ;;  %v3615_v17 = vmov 0.0   ;;  %v3617_v19 = vmov 0  }
  0x35   : > { %3584 = vsyncadd (%p3939_p0), [#allocation3], 4294942720  ;;  %v285_v2 = vunpack.c.l.s4 %v3608_v1  ;;  %s3610_s16 = smov 127   ;;  %s3611_s17 = smov 110   ;;  %3239 = vmatprep.subr.bf16.mxu1 %v3615_v17  ;;  %509 = vmatprep.mubr.bf16.mxu0 %v3617_v19  ;;  %vm3618_vm0 = vmmov 0   ;;  %v279_v20 = vld [vmem:[%s3925_s2] sm:$0xff] }
  0x36   : > { %s3741_s12 = scalar_select %p267_p5, %s3677_s25, 1  ;;  %v288_v3 = vshrl.u32 %v287_v0, 7  ;;  %3314 = vset.pattern.permute.xlu0 %v3617_v19  ;;  %3245 = vmatprep.mubr.msk.bf16.mxu1 %vm3618_vm0, %v3615_v17  ;;  %vm316_vm1 = vcmask 1039360   ;;  %vm408_vm2 = vcmask 1041408   ;;  %vm343_vm3 = vcmask 900096  }
  0x37   : > { %v286_v4 = vunpack.c.0.s8 %v285_v2  ;;  %s3612_s18 = smov 109   ;;  %s3613_s19 = smov 108   ;;  %vm330_vm4 = vcmask 1031168   ;;  %vm425_vm5 = vcmask 1045504   ;;  %vm418_vm6 = vcmask 1043456  }
  0x38   : > { %s2970_s11 = sshll.u32 %s3741_s12, 3  ;;  %s3614_s20 = smov 92   ;;  %vm368_vm7 = vcmask 883712   ;;  %vm380_vm8 = vcmask 752640   ;;  %vm356_vm9 = vcmask 891904   ;;  %vm392_vm10 = vcmask 744448  }
  0x39   : > { %s271_s14 = scalar_lea.vmem %s3923_s0, %s2970_s11  ;;  %v289_v5 = vsub.s32 %v286_v4, %v288_v3  ;;  %s3616_s26 = smov 91   ;;  %vm404_vm11 = vcmask 736256   ;;  %vm464_vm12 = vcmask 293888  }
  0x3a   : > { %v281_v6 = vld [vmem:[%s271_s14] sm:$0xff]  ;;  %s3619_s28 = smov 90   ;;  %s3249_s13 = smul.u32 24, %s3741_s12 }
  0x3b   : > { %v3747_v7 = vrot.slane %v281_v6, %v289_v5  ;;  %v299_v8 = vcombine.low %v281_v6, %v281_v6  ;;  %v283_v10 = vcombine.high %v281_v6, %v281_v6  ;;  %p3940_p9 = scmp.ne.s32.totalorder %s3933_s7, 0 }
  0x3d   : > { %324 = vrot.lane.b32.xlu1 %v3747_v7, %s3609_s15  ;;  %312 = vrot.lane.b32.xlu0 %v3747_v7, %s3610_s16  ;;  %v306_v9 = vrot.slane %v299_v8, %v289_v5  ;;  %v320_v12 = vcombine.low %v3747_v7, %v3747_v7  ;;  %v3755_v13 = vrot.slane %v283_v10, %v289_v5 }
  0x3e   : > { %v298_v15 = vcombine.high %v3747_v7, %v3747_v7 }
  0x3f   : > { %v307_v11 = vcombine.high %v306_v9, %v306_v9  ;;  %v321_v14 = vcombine.low %v3755_v13, %v3755_v13  ;;  %v334_v16 = vcombine.low %v306_v9, %v306_v9  ;;  %v347_v18 = vcombine.high %v3755_v13, %v3755_v13 }
  0x41   : > { %308 = vrot.lane.b32.xlu1 %v306_v9, %s3610_s16  ;;  %337 = vrot.lane.b32.xlu0 %v306_v9, %s3611_s17 }
  0x45   : > { %310 = vrot.lane.b32.xlu0 %v307_v11, %s3610_s16  ;;  %322 = vrot.lane.b32.xlu1 %v320_v12, %s3609_s15 }
  0x49   : > { %339 = vrot.lane.b32.xlu1 %v320_v12, %s3611_s17  ;;  %326 = vrot.lane.b32.xlu0 %v321_v14, %s3609_s15 }
  0x4d   : > { %350 = vrot.lane.b32.xlu1 %v298_v15, %s3612_s18  ;;  %335 = vrot.lane.b32.xlu0 %v334_v16, %s3611_s17 }
  0x51   : > { %362 = vrot.lane.b32.xlu1 %v307_v11, %s3613_s19  ;;  %352 = vrot.lane.b32.xlu0 %v3755_v13, %s3612_s18 }
  0x55   : > { %314 = vrot.lane.b32.xlu1 %v298_v15, %s3610_s16  ;;  %364 = vrot.lane.b32.xlu0 %v3747_v7, %s3613_s19  ;;  %s276_s16 = scalar_lea.vmem %s3928_s5, %s3249_s13 }
  0x59   : > { %360 = vrot.lane.b32.xlu1 %v306_v9, %s3613_s19  ;;  %348 = vrot.lane.b32.xlu0 %v3747_v7, %s3612_s18 }
  0x5d   : > { %376 = vrot.lane.b32.xlu1 %v321_v14, %s3614_s20  ;;  %374 = vrot.lane.b32.xlu0 %v3747_v7, %s3614_s20 }
  0x61   : > { %372 = vrot.lane.b32.xlu1 %v320_v12, %s3614_s20  ;;  %328 = vrot.lane.b32.xlu0 %v3755_v13, %s3609_s15 }
  0x65   : > { %388 = vrot.lane.b32.xlu1 %v320_v12, %s3616_s26  ;;  %386 = vrot.lane.b32.xlu0 %v306_v9, %s3616_s26 }
  0x69   : > { %384 = vrot.lane.b32.xlu1 %v334_v16, %s3616_s26  ;;  %341 = vrot.lane.b32.xlu0 %v3747_v7, %s3611_s17 }
  0x6d   : > { %366 = vrot.lane.b32.xlu1 %v298_v15, %s3613_s19  ;;  %354 = vrot.lane.b32.xlu0 %v347_v18, %s3612_s18  ;;  %s265_s18 = sand.u32 1, %s3595_s22   ;;  %s2967_s19 = sshll.u32 %s3677_s25, 4 }
  0x6e   : > { %s3881_s10 = scalar_lea.hbm %s3929_s6, %s2967_s19  ;;  %s2656_s11 = scalar_lea.sflag [#allocation4], %s265_s18 }
  0x6f   : > { %s3620_s25 = smov [#allocation5]  }
  0x70   : > { %s3541_s13 = sshll.u32 %s3620_s25, 4  ;;  %s3542_s13 = int_to_ptr.vmem [resolvable:$false] %s3541_s13 }
  0x71   : > { %390 = vrot.lane.b32.xlu1 %v3747_v7, %s3616_s26  ;;  %378 = vrot.lane.b32.xlu0 %v3755_v13, %s3614_s20  ;;  %s266_s20 = scalar_lea.vmem [#allocation5], %s265_s18  ;;  %s3543_s14 = scalar_lea.vmem %s3542_s13, 32 }
  0x72   : > { %s2671_s26 = sshll.u32 %s266_s20, 4  ;;  %s3883_s26 = int_to_ptr.vmem [resolvable:$true] %s2671_s26 }
  0x73   : > { %s3537_s9 = scalar_lea.vmem %s3883_s26, 16  ;;  %p3544_p2 = scmp.lt.s32.totalorder %s3883_s26, %s3542_s13 }
  0x74   : > { %p3538_p6 = scmp.ne.s32.totalorder %s3883_s26, %s3537_s9  ;;  %p3545_p3 = scmp.lt.s32.totalorder %s3543_s14, %s3537_s9 }
  0x75   : > { %398 = vrot.lane.b32.xlu1 %v298_v15, %s3619_s28  ;;  %396 = vrot.lane.b32.xlu0 %v3747_v7, %s3619_s28 }
  0x76   : > { %p3539_p10 = pnand %p3538_p6, %p3940_p9  ;;  %p3546_p4 = por %p3545_p3, %p3544_p2 }
  0x78   : > { %p3540_p12 = pneg %p3539_p10 }
  0x79   : > { %402 = vrot.lane.b32.xlu1 %v347_v18, %s3619_s28  ;;  %400 = vrot.lane.b32.xlu0 %v3755_v13, %s3619_s28 }
  0x7a   : > { %p3547_p7 = pnand %p3546_p4, %p3540_p12 }
  0x7d   : > { %461 = vperm.xlu0 %3314, %v279_v20  }
  0xaf   : > { %v325_v21 = vpop.permute.xlu1 %324  ;;  %v313_v22 = vpop.permute.xlu0 %312 }
  0xb3   : > { %v309_v23 = vpop.permute.xlu1 %308  ;;  %v338_v24 = vpop.permute.xlu0 %337 }
  0xb7   : > { %v311_v25 = vpop.permute.xlu0 %310  ;;  %v323_v26 = vpop.permute.xlu1 %322 }
  0xb8   : > { %v318_v27 = vsel %vm316_vm1, %v311_v25, %v313_v22  ;;  %v317_v28 = vsel %vm316_vm1, %v309_v23, %v311_v25  ;;  %v331_v35 = vsel %vm330_vm4, %v323_v26, %v325_v21 }
  0xb9   : > { %v414_v31 = vsel %vm408_vm2, %v298_v15, %v318_v27  ;;  %v411_v34 = vsel %vm408_vm2, %v3747_v7, %v317_v28 }
  0xba   : > { %v420_v41 = vsel %vm418_vm6, %v411_v34, %v331_v35 }
  0xbb   : > { %v340_v29 = vpop.permute.xlu1 %339  ;;  %v327_v30 = vpop.permute.xlu0 %326 }
  0xbc   : > { %v345_v32 = vsel %vm343_vm3, %v338_v24, %v340_v29  ;;  %v332_v33 = vsel %vm330_vm4, %v325_v21, %v327_v30 }
  0xbd   : > { %v422_v36 = vsel %vm418_vm6, %v414_v31, %v332_v33  ;;  %v3319_v31 = vld [vmem:[#allocation2 + $0xc0] sm:$0xff]  }
  0xbe   : > { %v430_v37 = vsel %vm425_vm5, %v422_v36, %v345_v32  ;;  %v278_v36 = vld [vmem:[%s3924_s1] sm:$0xf] }
  0xbf   : > { %v351_v38 = vpop.permute.xlu1 %350  ;;  %477 = vmatprep.subr.bf16.mxu0 %v430_v37  ;;  %v336_v39 = vpop.permute.xlu0 %335  ;;  %v3320_v37 = vld [vmem:[#allocation2 + $0x80] sm:$0xff]  }
  0xc0   : > { %v344_v40 = vsel %vm343_vm3, %v336_v39, %v338_v24  ;;  %v3323_v39 = vld [vmem:[#allocation2 + $0xc8] sm:$0xff]  }
  0xc1   : > { %v427_v42 = vsel %vm425_vm5, %v420_v41, %v344_v40  ;;  %v3322_v40 = vld [vmem:[#allocation2 + $0x8] sm:$0xff]  }
  0xc2   : > { %478 = vmatpush1.bf16.msra.mxu0 %v427_v42  ;;  %v3324_v41 = vld [vmem:[#allocation2 + $0x88] sm:$0xff]   ;;  %v3325_v42 = vld [vmem:[#allocation2 + $0x50] sm:$0xff]  }
  0xc3   : > { %v363_v43 = vpop.permute.xlu1 %362  ;;  %v353_v44 = vpop.permute.xlu0 %352 }
  0xc4   : > { %v358_v55 = vsel %vm356_vm9, %v351_v38, %v353_v44 }
  0xc7   : > { %v315_v45 = vpop.permute.xlu1 %314  ;;  %v365_v46 = vpop.permute.xlu0 %364 }
  0xc8   : > { %v370_v53 = vsel %vm368_vm7, %v363_v43, %v365_v46  ;;  %v319_v56 = vsel %vm316_vm1, %v313_v22, %v315_v45  ;;  %v3328_v45 = vld [vmem:[#allocation2 + $0x90] sm:$0xff]  }
  0xc9   : > { %v440_v57 = vsel %vm408_vm2, %v358_v55, %v370_v53  ;;  %v417_v3 = vsel %vm408_vm2, %v3755_v13, %v319_v56  ;;  %v3336_v53 = vld [vmem:[#allocation2 + $0xa0] sm:$0xff]   ;;  %v3339_v55 = vld [vmem:[#allocation2 + $0xe8] sm:$0xff]  }
  0xca   : > { %v3338_v56 = vld [vmem:[#allocation2 + $0x28] sm:$0xff]  }
  0xcb   : > { %v361_v47 = vpop.permute.xlu1 %360  ;;  %v349_v48 = vpop.permute.xlu0 %348 }
  0xcc   : > { %v369_v60 = vsel %vm368_vm7, %v361_v47, %v363_v43  ;;  %v357_v61 = vsel %vm356_vm9, %v349_v48, %v351_v38  ;;  %v3321_v38 = vld [vmem:[#allocation2 + $0x48] sm:$0xff]   ;;  %v3327_v43 = vld [vmem:[#allocation2 + $0xd0] sm:$0xff]   ;;  %v3331_v47 = vld [vmem:[#allocation2 + $0xd8] sm:$0xff]  }
  0xcd   : > { %v437_v4 = vsel %vm408_vm2, %v357_v61, %v369_v60  ;;  %v3330_v48 = vld [vmem:[#allocation2 + $0x18] sm:$0xff]   ;;  %v3343_v60 = vld [vmem:[#allocation2 + $0xf0] sm:$0xff]  }
  0xce   : > { %v3344_v61 = vld [vmem:[#allocation2 + $0xb0] sm:$0xff]  }
  0xcf   : > { %v377_v49 = vpop.permute.xlu1 %376  ;;  %v375_v50 = vpop.permute.xlu0 %374 }
  0xd0   : > { %v382_v54 = vsel %vm380_vm8, %v375_v50, %v377_v49 }
  0xd1   : > { %v447_v63 = vsel %vm418_vm6, %v440_v57, %v382_v54  ;;  %v3337_v54 = vld [vmem:[#allocation2 + $0x68] sm:$0xff]  }
  0xd2   : > { %v3340_v57 = vld [vmem:[#allocation2 + $0xa8] sm:$0xff]  }
  0xd3   : > { %v373_v51 = vpop.permute.xlu1 %372  ;;  %v329_v52 = vpop.permute.xlu0 %328 }
  0xd4   : > { %v381_v0 = vsel %vm380_vm8, %v373_v51, %v375_v50  ;;  %v333_v1 = vsel %vm330_vm4, %v327_v30, %v329_v52  ;;  %v3317_v30 = vld [vmem:[#allocation2 + $0x40] sm:$0xff]  }
  0xd5   : > { %v445_v9 = vsel %vm418_vm6, %v437_v4, %v381_v0  ;;  %v424_v10 = vsel %vm418_vm6, %v417_v3, %v333_v1  ;;  %v3333_v50 = vld [vmem:[#allocation2 + $0x60] sm:$0xff]   ;;  %v3347_v0 = vld [vmem:[#allocation2 + $0xf8] sm:$0xff]  }
  0xd6   : > { %v3335_v51 = vld [vmem:[#allocation2 + $0xe0] sm:$0xff]   ;;  %v3348_v1 = vld [vmem:[#allocation2 + $0xb8] sm:$0xff]  }
  0xd7   : > { %v389_v58 = vpop.permute.xlu1 %388  ;;  %v387_v59 = vpop.permute.xlu0 %386  ;;  %v3334_v52 = vld [vmem:[#allocation2 + $0x20] sm:$0xff]  }
  0xd8   : > { %v394_v62 = vsel %vm392_vm10, %v387_v59, %v389_v58  ;;  %v3351_v3 = vld [vmem:[#allocation2 + $0x1c0] sm:$0xff]  }
  0xd9   : > { %v454_v2 = vsel %vm425_vm5, %v447_v63, %v394_v62  ;;  %v3345_v62 = vld [vmem:[#allocation2 + $0x78] sm:$0xff]  }
  0xda   : > { %479 = vmatprep.subr.bf16.mxu0 %v454_v2  ;;  %v3346_v63 = vld [vmem:[#allocation2 + $0x38] sm:$0xff]   ;;  %v3349_v2 = vld [vmem:[#allocation2 + $0x140] sm:$0xff]  }
  0xdb   : > { %v385_v5 = vpop.permute.xlu1 %384  ;;  %v342_v6 = vpop.permute.xlu0 %341 }
  0xdc   : > { %v393_v7 = vsel %vm392_vm10, %v385_v5, %v387_v59  ;;  %v346_v8 = vsel %vm343_vm3, %v340_v29, %v342_v6  ;;  %v3342_v59 = vld [vmem:[#allocation2 + $0x30] sm:$0xff]  }
  0xdd   : > { %v451_v11 = vsel %vm425_vm5, %v445_v9, %v393_v7  ;;  %v433_v12 = vsel %vm425_vm5, %v424_v10, %v346_v8 }
  0xde   : > { %480 = vmatpush1.bf16.msra.mxu0 %v451_v11  ;;  %3240 = vmatpush3.bf16.msra.mxu1 %v433_v12 }
  0xdf   : > { %v367_v14 = vpop.permute.xlu1 %366  ;;  %v355_v13 = vpop.permute.xlu0 %354  ;;  %3241 = vmatprep.subr.bf16.mxu1 %v3615_v17 }
  0xe0   : > { %v371_v15 = vsel %vm368_vm7, %v365_v46, %v367_v14  ;;  %v359_v16 = vsel %vm356_vm9, %v353_v44, %v355_v13  ;;  %v3326_v44 = vld [vmem:[#allocation2 + $0x10] sm:$0xff]   ;;  %v3329_v46 = vld [vmem:[#allocation2 + $0x58] sm:$0xff]  }
  0xe1   : > { %v443_v20 = vsel %vm408_vm2, %v359_v16, %v371_v15 }
  0xe3   : > { %v391_v18 = vpop.permute.xlu1 %390  ;;  %v379_v19 = vpop.permute.xlu0 %378 }
  0xe4   : > { %v395_v21 = vsel %vm392_vm10, %v389_v58, %v391_v18  ;;  %v383_v22 = vsel %vm380_vm8, %v377_v49, %v379_v19  ;;  %v3332_v49 = vld [vmem:[#allocation2 + $0x98] sm:$0xff]   ;;  %v3341_v58 = vld [vmem:[#allocation2 + $0x70] sm:$0xff]  }
  0xe5   : > { %v449_v23 = vsel %vm418_vm6, %v443_v20, %v383_v22 }
  0xe6   : > { %v457_v24 = vsel %vm425_vm5, %v449_v23, %v395_v21  ;;  %v3350_v23 = vld [vmem:[#allocation2 + $0x100] sm:$0xff]  }
  0xe7   : > { %v399_v25 = vpop.permute.xlu1 %398  ;;  %3242 = vmatpush3.bf16.msra.mxu1 %v457_v24  ;;  %v397_v26 = vpop.permute.xlu0 %396 }
  0xe8   : > { %3243 = vmatprep.subr.bf16.mxu1 %v3615_v17  ;;  %v405_v27 = vsel %vm404_vm11, %v397_v26, %v399_v25  ;;  %v3318_v17 = vld [vmem:[#allocation2] sm:$0xff]  }
  0xe9   : > { %v469_v34 = vsel %vm408_vm2, %v405_v27, 0 }
  0xeb   : > { %v403_v28 = vpop.permute.xlu1 %402  ;;  %v401_v29 = vpop.permute.xlu0 %400 }
  0xec   : > { %v406_v32 = vsel %vm404_vm11, %v399_v25, %v401_v29  ;;  %v407_v33 = vsel %vm404_vm11, %v401_v29, %v403_v28  ;;  %v3352_v28 = vld [vmem:[#allocation2 + $0x180] sm:$0xff]  }
  0xed   : > { %2772 = vmatprep.subr.msk.bf16.mxu0 %vm408_vm2, %v406_v32  ;;  %v475_v35 = vsel %vm408_vm2, %v407_v33, 0  ;;  %v3355_v32 = vld [vmem:[#allocation2 + $0x1c8] sm:$0xff]  }
  0xee   : > { %482 = vmatpush1.bf16.msra.mxu0 %v469_v34  ;;  %3244 = vmatpush3.bf16.msra.mxu1 %v475_v35  ;;  %v3354_v33 = vld [vmem:[#allocation2 + $0x108] sm:$0xff]   ;;  %v3357_v35 = vld [vmem:[#allocation2 + $0x150] sm:$0xff]  }
  0xef   : > { %2975 = vmatprep.subr.bf16.mxu0 %v3317_v30  ;;  %2997 = vmatprep.subr.bf16.mxu1 %v3319_v31  ;;  %v3353_v31 = vld [vmem:[#allocation2 + $0x148] sm:$0xff]  }
  0xf0   : > { %v3356_v34 = vld [vmem:[#allocation2 + $0x188] sm:$0xff]  }
  0xf1   : > { %2773 = vmatmul.mubr.msk.bf16.vlgmr.msra.gmra.mrb[0].mxu0 %vm464_vm12, %v278_v36  ;;  %3246 = vmatmul.mubr.msk.bf16.vlgmr.msra.gmra.mrb[0].mxu1 %vm464_vm12, %v278_v36  ;;  %v3359_v36 = vld [vmem:[#allocation2 + $0x1d0] sm:$0xff]  }
  0xf2   : > { %2976 = vmatpush3.bf16.msra.mxu0 %v3318_v17  ;;  %2998 = vmatpush3.bf16.msra.mxu1 %v3320_v37  ;;  %v3358_v17 = vld [vmem:[#allocation2 + $0x110] sm:$0xff]  }
  0xf3   : > { %2977 = vmatprep.subr.bf16.mxu0 %v3321_v38  ;;  %2999 = vmatprep.subr.bf16.mxu1 %v3323_v39  ;;  %v3360_v37 = vld [vmem:[#allocation2 + $0x190] sm:$0xff]   ;;  %v3361_v38 = vld [vmem:[#allocation2 + $0x158] sm:$0xff]  }
  0xf4   : > { %v3363_v39 = vld [vmem:[#allocation2 + $0x1d8] sm:$0xff]  }
  0xf6   : > { %2978 = vmatpush3.bf16.msra.mxu0 %v3322_v40  ;;  %3000 = vmatpush3.bf16.msra.mxu1 %v3324_v41  ;;  %v3362_v40 = vld [vmem:[#allocation2 + $0x118] sm:$0xff]  }
  0xf7   : > { %2979 = vmatprep.subr.bf16.mxu0 %v3325_v42  ;;  %3001 = vmatprep.subr.bf16.mxu1 %v3327_v43  ;;  %v3364_v41 = vld [vmem:[#allocation2 + $0x198] sm:$0xff]   ;;  %v3365_v42 = vld [vmem:[#allocation2 + $0x160] sm:$0xff]  }
  0xf8   : > { %v3367_v43 = vld [vmem:[#allocation2 + $0x1e0] sm:$0xff]  }
  0xfa   : > { %2980 = vmatpush3.bf16.msra.mxu0 %v3326_v44  ;;  %3002 = vmatpush3.bf16.msra.mxu1 %v3328_v45  ;;  %v3366_v44 = vld [vmem:[#allocation2 + $0x120] sm:$0xff]  }
  0xfb   : > { %2981 = vmatprep.subr.bf16.mxu0 %v3329_v46  ;;  %3003 = vmatprep.subr.bf16.mxu1 %v3331_v47  ;;  %v3368_v45 = vld [vmem:[#allocation2 + $0x1a0] sm:$0xff]   ;;  %v3369_v46 = vld [vmem:[#allocation2 + $0x168] sm:$0xff]  }
  0xfc   : > { %v462_v4 = vpop.permute.xlu0 %461  ;;  %v3371_v47 = vld [vmem:[#allocation2 + $0x1e8] sm:$0xff]  }
  0xfe   : > { %2982 = vmatpush3.bf16.msra.mxu0 %v3330_v48  ;;  %3004 = vmatpush3.bf16.msra.mxu1 %v3332_v49  ;;  %v3370_v48 = vld [vmem:[#allocation2 + $0x128] sm:$0xff]  }
  0xff   : > { %2983 = vmatprep.subr.bf16.mxu0 %v3333_v50  ;;  %3005 = vmatprep.subr.bf16.mxu1 %v3335_v51  ;;  %v3372_v49 = vld [vmem:[#allocation2 + $0x1a8] sm:$0xff]   ;;  %v3373_v50 = vld [vmem:[#allocation2 + $0x170] sm:$0xff]  }
 0x100   : > { %v3375_v51 = vld [vmem:[#allocation2 + $0x1f0] sm:$0xff]  }
 0x102   : > { %2984 = vmatpush3.bf16.msra.mxu0 %v3334_v52  ;;  %3006 = vmatpush3.bf16.msra.mxu1 %v3336_v53  ;;  %v3374_v52 = vld [vmem:[#allocation2 + $0x130] sm:$0xff]  }
 0x103   : > { %2985 = vmatprep.subr.bf16.mxu0 %v3337_v54  ;;  %3007 = vmatprep.subr.bf16.mxu1 %v3339_v55  ;;  %v3376_v53 = vld [vmem:[#allocation2 + $0x1b0] sm:$0xff]   ;;  %v3377_v54 = vld [vmem:[#allocation2 + $0x178] sm:$0xff]  }
 0x104   : > { %v3379_v55 = vld [vmem:[#allocation2 + $0x1f8] sm:$0xff]  }
 0x106   : > { %2986 = vmatpush3.bf16.msra.mxu0 %v3338_v56  ;;  %3008 = vmatpush3.bf16.msra.mxu1 %v3340_v57  ;;  %v3378_v56 = vld [vmem:[#allocation2 + $0x138] sm:$0xff]  }
 0x107   : > { %2987 = vmatprep.subr.bf16.mxu0 %v3341_v58  ;;  %3009 = vmatprep.subr.bf16.mxu1 %v3343_v60  ;;  %v3380_v57 = vld [vmem:[#allocation2 + $0x1b8] sm:$0xff]  }
 0x10a   : > { %2988 = vmatpush3.bf16.msra.mxu0 %v3342_v59  ;;  %3010 = vmatpush3.bf16.msra.mxu1 %v3344_v61  ;;  %v3381_v59 = vld [vmem:[#allocation2 + $0x240] sm:$0xff]  }
 0x10b   : > { %2989 = vmatprep.subr.bf16.mxu0 %v3345_v62  ;;  %3011 = vmatprep.subr.bf16.mxu1 %v3347_v0  ;;  %v3383_v61 = vld [vmem:[#allocation2 + $0x2c0] sm:$0xff]  }
 0x10e   : > { %2990 = vmatpush3.bf16.msra.mxu0 %v3346_v63  ;;  %3012 = vmatpush3.bf16.msra.mxu1 %v3348_v1  ;;  %v3382_v63 = vld [vmem:[#allocation2 + $0x200] sm:$0xff]  }
 0x10f   : > { %3019 = vmatprep.subr.bf16.mxu0 %v3349_v2  ;;  %3041 = vmatprep.subr.bf16.mxu1 %v3351_v3  ;;  %v3384_v2 = vld [vmem:[#allocation2 + $0x280] sm:$0xff]  }
 0x1c4   : > { %v511_v5 = vpop.f32.mrb[0].mxu0  ;;  %v552_v6 = vpop.f32.mrb[0].mxu1 }
 0x1c5   : > { %v512_v7 = vadd.f32 %v511_v5, %v462_v4  ;;  %v513_v8 = vpop.f32.mrb[1].mxu0  ;;  %v553_v9 = vadd.f32 %v552_v6, %v462_v4  ;;  %v3247_v10 = vpop.f32.mrb[1].mxu1  ;;  %v3387_v6 = vld [vmem:[#allocation2 + $0x2c8] sm:$0xff]  }
 0x1c6   : > { %v514_v11 = vadd.f32 %v513_v8, %v462_v4  ;;  %v515_v12 = vpop.f32.mrb[2].mxu0  ;;  %v555_v14 = vpop.f32.mrb[2].mxu1  ;;  %v3385_v4 = vld [vmem:[#allocation2 + $0x248] sm:$0xff]   ;;  %v3389_v10 = vld [vmem:[#allocation2 + $0x250] sm:$0xff]  }
 0x1c7   : > { %v3837_v13 = vmax.f32 %v512_v7, 0.0  ;;  %v3839_v15 = vmax.f32 %v553_v9, 0.0  ;;  %v516_v16 = vpop.f32.mrb[3].mxu0  ;;  %v3248_v18 = vpop.f32.mrb[3].mxu1  ;;  %v3386_v8 = vld [vmem:[#allocation2 + $0x208] sm:$0xff]   ;;  %v3390_v12 = vld [vmem:[#allocation2 + $0x210] sm:$0xff]  }
 0x1c8   : > { %v3841_v19 = vmax.f32 %v514_v11, 0.0  ;;  %v3388_v9 = vld [vmem:[#allocation2 + $0x288] sm:$0xff]   ;;  %v3391_v11 = vld [vmem:[#allocation2 + $0x2d0] sm:$0xff]   ;;  %v3393_v16 = vld [vmem:[#allocation2 + $0x258] sm:$0xff]  }
 0x1c9   : > { %561 = vst [vmem:[%s276_s16] sm:$0xff] %v3837_v13  ;;  %563 = vst [vmem:[%s276_s16 + $0x10] sm:$0xff] %v3839_v15  ;;  %v567_v20 = vrot.slane %v3837_v13, 1  ;;  %v569_v21 = vrot.slane %v3839_v15, 1  ;;  %v609_v25 = vpack.c.bf16 %v3837_v13, %v3837_v13  ;;  %v611_v29 = vpack.c.bf16 %v3839_v15, %v3839_v15  ;;  %v3392_v14 = vld [vmem:[#allocation2 + $0x290] sm:$0xff]   ;;  %v3395_v18 = vld [vmem:[#allocation2 + $0x2d8] sm:$0xff]  }
 0x1ca   : > { %562 = vst [vmem:[%s276_s16 + $0x8] sm:$0xff] %v3841_v19  ;;  %v610_v22 = vpack.c.bf16 %v3841_v19, %v3841_v19  ;;  %v574_v24 = vrot.slane %v3841_v19, 2  ;;  %v568_v58 = vrot.slane %v3841_v19, 1  ;;  %v573_v60 = vrot.slane %v3837_v13, 2 }
 0x1cb   : > { %v612_v26 = vpack.c.bf16 %v567_v20, %v567_v20  ;;  %v614_v27 = vpack.c.bf16 %v569_v21, %v569_v21  ;;  %v579_v62 = vrot.slane %v3837_v13, 3  ;;  %v581_v0 = vrot.slane %v3839_v15, 3  ;;  %v3394_v20 = vld [vmem:[#allocation2 + $0x218] sm:$0xff]  }
 0x1cc   : > { %2201 = vmatprep.mubr.bf16.mxu0 %v610_v22  ;;  %v616_v30 = vpack.c.bf16 %v574_v24, %v574_v24  ;;  %v613_v1 = vpack.c.bf16 %v568_v58, %v568_v58  ;;  %v615_v3 = vpack.c.bf16 %v573_v60, %v573_v60  ;;  %v3396_v21 = vld [vmem:[#allocation2 + $0x298] sm:$0xff]   ;;  %v3397_v22 = vld [vmem:[#allocation2 + $0x260] sm:$0xff]  }
 0x1cd   : > { %2202 = vmatmul.mubr.bf16.vlgmr.msra.gmra.mrb[4].mxu0 %v609_v25  ;;  %2241 = vmatprep.mubr.bf16.mxu1 %v612_v26  ;;  %v618_v5 = vpack.c.bf16 %v579_v62, %v579_v62  ;;  %v620_v7 = vpack.c.bf16 %v581_v0, %v581_v0  ;;  %v3398_v24 = vld [vmem:[#allocation2 + $0x220] sm:$0xff]   ;;  %v3401_v26 = vld [vmem:[#allocation2 + $0x268] sm:$0xff]   ;;  %v3427_v58 = vld [vmem:[#allocation2 + $0x3d8] sm:$0xff]  }
 0x1ce   : > { %3020 = vmatpush3.bf16.msra.mxu0 %v3350_v23  ;;  %2242 = vmatmul.mubr.bf16.vlgmr.msra.gmra.mrb[4].mxu1 %v611_v29  ;;  %v3399_v23 = vld [vmem:[#allocation2 + $0x2e0] sm:$0xff]   ;;  %v3404_v29 = vld [vmem:[#allocation2 + $0x2a8] sm:$0xff]   ;;  %v3428_v60 = vld [vmem:[#allocation2 + $0x398] sm:$0xff]  }
 0x1cf   : > { %2281 = vmatprep.mubr.bf16.mxu0 %v614_v27  ;;  %3042 = vmatpush3.bf16.msra.mxu1 %v3352_v28  ;;  %v3400_v25 = vld [vmem:[#allocation2 + $0x2a0] sm:$0xff]   ;;  %v3403_v27 = vld [vmem:[#allocation2 + $0x2e8] sm:$0xff]  }
 0x1d0   : > { %2321 = vmatprep.mubr.bf16.mxu1 %v616_v30  ;;  %3021 = vmatprep.subr.bf16.mxu0 %v3353_v31  ;;  %v3402_v28 = vld [vmem:[#allocation2 + $0x228] sm:$0xff]   ;;  %v3405_v30 = vld [vmem:[#allocation2 + $0x270] sm:$0xff]   ;;  %v3431_v62 = vld [vmem:[#allocation2 + $0x3e0] sm:$0xff]  }
 0x1d1   : > { %3043 = vmatprep.subr.bf16.mxu1 %v3355_v32  ;;  %v3407_v31 = vld [vmem:[#allocation2 + $0x2f0] sm:$0xff]   ;;  %v3432_v0 = vld [vmem:[#allocation2 + $0x3a0] sm:$0xff]  }
 0x1d2   : > { %3022 = vmatpush3.bf16.msra.mxu0 %v3354_v33  ;;  %v3406_v32 = vld [vmem:[#allocation2 + $0x230] sm:$0xff]  }
 0x1d3   : > { %3044 = vmatpush3.bf16.msra.mxu1 %v3356_v34  ;;  %3023 = vmatprep.subr.bf16.mxu0 %v3357_v35  ;;  %v3408_v33 = vld [vmem:[#allocation2 + $0x2b0] sm:$0xff]   ;;  %v3409_v34 = vld [vmem:[#allocation2 + $0x278] sm:$0xff]  }
 0x1d4   : > { %3045 = vmatprep.subr.bf16.mxu1 %v3359_v36  ;;  %v3411_v35 = vld [vmem:[#allocation2 + $0x2f8] sm:$0xff]  }
 0x1d5   : > { %v3410_v36 = vld [vmem:[#allocation2 + $0x238] sm:$0xff]  }
 0x1d6   : > { %3024 = vmatpush3.bf16.msra.mxu0 %v3358_v17  ;;  %v3412_v17 = vld [vmem:[#allocation2 + $0x2b8] sm:$0xff]  }
 0x1d7   : > { %3046 = vmatpush3.bf16.msra.mxu1 %v3360_v37  ;;  %3025 = vmatprep.subr.bf16.mxu0 %v3361_v38  ;;  %v575_v37 = vrot.slane %v3839_v15, 2  ;;  %v3413_v38 = vld [vmem:[#allocation2 + $0x340] sm:$0xff]  }
 0x1d8   : > { %3047 = vmatprep.subr.bf16.mxu1 %v3363_v39  ;;  %v580_v39 = vrot.slane %v3841_v19, 3 }
 0x1da   : > { %3026 = vmatpush3.bf16.msra.mxu0 %v3362_v40  ;;  %v3415_v40 = vld [vmem:[#allocation2 + $0x3c0] sm:$0xff]  }
 0x1db   : > { %3048 = vmatpush3.bf16.msra.mxu1 %v3364_v41  ;;  %3027 = vmatprep.subr.bf16.mxu0 %v3365_v42  ;;  %v586_v41 = vrot.slane %v3841_v19, 4  ;;  %v3414_v42 = vld [vmem:[#allocation2 + $0x300] sm:$0xff]  }
 0x1dc   : > { %3049 = vmatprep.subr.bf16.mxu1 %v3367_v43  ;;  %v591_v43 = vrot.slane %v3837_v13, 5 }
 0x1de   : > { %3028 = vmatpush3.bf16.msra.mxu0 %v3366_v44  ;;  %v617_v44 = vpack.c.bf16 %v575_v37, %v575_v37  ;;  %v3459_v37 = vld [vmem:[#allocation2 + $0x4d8] sm:$0xff]  }
 0x1df   : > { %3050 = vmatpush3.bf16.msra.mxu1 %v3368_v45  ;;  %3029 = vmatprep.subr.bf16.mxu0 %v3369_v46  ;;  %v3416_v45 = vld [vmem:[#allocation2 + $0x380] sm:$0xff]   ;;  %v619_v46 = vpack.c.bf16 %v580_v39, %v580_v39  ;;  %v3460_v39 = vld [vmem:[#allocation2 + $0x498] sm:$0xff]  }
 0x1e0   : > { %3051 = vmatprep.subr.bf16.mxu1 %v3371_v47  ;;  %v3417_v47 = vld [vmem:[#allocation2 + $0x348] sm:$0xff]  }
 0x1e2   : > { %3030 = vmatpush3.bf16.msra.mxu0 %v3370_v48  ;;  %v622_v48 = vpack.c.bf16 %v586_v41, %v586_v41  ;;  %v3463_v41 = vld [vmem:[#allocation2 + $0x4e0] sm:$0xff]  }
 0x1e3   : > { %3052 = vmatpush3.bf16.msra.mxu1 %v3372_v49  ;;  %3031 = vmatprep.subr.bf16.mxu0 %v3373_v50  ;;  %v3419_v49 = vld [vmem:[#allocation2 + $0x3c8] sm:$0xff]   ;;  %v624_v50 = vpack.c.bf16 %v591_v43, %v591_v43  ;;  %v3464_v43 = vld [vmem:[#allocation2 + $0x4a0] sm:$0xff]  }
 0x1e4   : > { %3053 = vmatprep.subr.bf16.mxu1 %v3375_v51  ;;  %v3418_v51 = vld [vmem:[#allocation2 + $0x308] sm:$0xff]  }
 0x1e6   : > { %3032 = vmatpush3.bf16.msra.mxu0 %v3374_v52  ;;  %v3420_v52 = vld [vmem:[#allocation2 + $0x388] sm:$0xff]  }
 0x1e7   : > { %3054 = vmatpush3.bf16.msra.mxu1 %v3376_v53  ;;  %3033 = vmatprep.subr.bf16.mxu0 %v3377_v54  ;;  %v3421_v53 = vld [vmem:[#allocation2 + $0x350] sm:$0xff]  }
 0x1e8   : > { %3055 = vmatprep.subr.bf16.mxu1 %v3379_v55  ;;  %v3423_v54 = vld [vmem:[#allocation2 + $0x3d0] sm:$0xff]  }
 0x1e9   : > { %v3422_v55 = vld [vmem:[#allocation2 + $0x310] sm:$0xff]  }
 0x1ea   : > { %3034 = vmatpush3.bf16.msra.mxu0 %v3378_v56  ;;  %v3424_v56 = vld [vmem:[#allocation2 + $0x390] sm:$0xff]  }
 0x1eb   : > { %3056 = vmatpush3.bf16.msra.mxu1 %v3380_v57  ;;  %3063 = vmatprep.subr.bf16.mxu0 %v3381_v59  ;;  %v3425_v57 = vld [vmem:[#allocation2 + $0x358] sm:$0xff]  }
 0x1ec   : > { %3085 = vmatprep.subr.bf16.mxu1 %v3383_v61  ;;  %v3426_v59 = vld [vmem:[#allocation2 + $0x318] sm:$0xff]   ;;  %v3429_v61 = vld [vmem:[#allocation2 + $0x360] sm:$0xff]  }
 0x1ed   : > { %2282 = vmatmul.mubr.bf16.vlgmr.msra.gmra.mrb[8].mxu0 %v613_v1  ;;  %v3433_v1 = vld [vmem:[#allocation2 + $0x368] sm:$0xff]  }
 0x1ee   : > { %2322 = vmatmul.mubr.bf16.vlgmr.msra.gmra.mrb[8].mxu1 %v615_v3  ;;  %3064 = vmatpush3.bf16.msra.mxu0 %v3382_v63  ;;  %v3430_v63 = vld [vmem:[#allocation2 + $0x320] sm:$0xff]   ;;  %v3434_v3 = vld [vmem:[#allocation2 + $0x328] sm:$0xff]  }
 0x1ef   : > { %2361 = vmatprep.mubr.bf16.mxu0 %v618_v5  ;;  %3086 = vmatpush3.bf16.msra.mxu1 %v3384_v2  ;;  %v3435_v2 = vld [vmem:[#allocation2 + $0x3e8] sm:$0xff]   ;;  %v3437_v5 = vld [vmem:[#allocation2 + $0x370] sm:$0xff]  }
 0x1f0   : > { %2401 = vmatprep.mubr.bf16.mxu1 %v620_v7  ;;  %3065 = vmatprep.subr.bf16.mxu0 %v3385_v4  ;;  %v3436_v4 = vld [vmem:[#allocation2 + $0x3a8] sm:$0xff]   ;;  %v3438_v7 = vld [vmem:[#allocation2 + $0x330] sm:$0xff]  }
 0x1f1   : > { %3087 = vmatprep.subr.bf16.mxu1 %v3387_v6  ;;  %v3439_v6 = vld [vmem:[#allocation2 + $0x3f0] sm:$0xff]  }
 0x1f2   : > { %3066 = vmatpush3.bf16.msra.mxu0 %v3386_v8  ;;  %v3440_v8 = vld [vmem:[#allocation2 + $0x3b0] sm:$0xff]  }
 0x1f3   : > { %3088 = vmatpush3.bf16.msra.mxu1 %v3388_v9  ;;  %3067 = vmatprep.subr.bf16.mxu0 %v3389_v10  ;;  %v3441_v9 = vld [vmem:[#allocation2 + $0x378] sm:$0xff]  }
 0x1f4   : > { %3089 = vmatprep.subr.bf16.mxu1 %v3391_v11  ;;  %v3443_v10 = vld [vmem:[#allocation2 + $0x3f8] sm:$0xff]  }
 0x1f5   : > { %v3442_v11 = vld [vmem:[#allocation2 + $0x338] sm:$0xff]  }
 0x1f6   : > { %3068 = vmatpush3.bf16.msra.mxu0 %v3390_v12  ;;  %v3444_v12 = vld [vmem:[#allocation2 + $0x3b8] sm:$0xff]  }
 0x1f7   : > { %3090 = vmatpush3.bf16.msra.mxu1 %v3392_v14  ;;  %3069 = vmatprep.subr.bf16.mxu0 %v3393_v16  ;;  %v585_v14 = vrot.slane %v3837_v13, 4  ;;  %v3445_v16 = vld [vmem:[#allocation2 + $0x440] sm:$0xff]  }
 0x1f8   : > { %3091 = vmatprep.subr.bf16.mxu1 %v3395_v18  ;;  %v587_v18 = vrot.slane %v3839_v15, 4 }
 0x1fa   : > { %3070 = vmatpush3.bf16.msra.mxu0 %v3394_v20  ;;  %v3447_v20 = vld [vmem:[#allocation2 + $0x4c0] sm:$0xff]  }
 0x1fb   : > { %3092 = vmatpush3.bf16.msra.mxu1 %v3396_v21  ;;  %3071 = vmatprep.subr.bf16.mxu0 %v3397_v22  ;;  %v593_v21 = vrot.slane %v3839_v15, 5  ;;  %v3446_v22 = vld [vmem:[#allocation2 + $0x400] sm:$0xff]  }
 0x1fc   : > { %3093 = vmatprep.subr.bf16.mxu1 %v3399_v23  ;;  %v598_v23 = vrot.slane %v3841_v19, 6 }
 0x1fe   : > { %3072 = vmatpush3.bf16.msra.mxu0 %v3398_v24  ;;  %v621_v24 = vpack.c.bf16 %v585_v14, %v585_v14  ;;  %v3490_v14 = vld [vmem:[#allocation2 + $0x518] sm:$0xff]  }
 0x1ff   : > { %3094 = vmatpush3.bf16.msra.mxu1 %v3400_v25  ;;  %3073 = vmatprep.subr.bf16.mxu0 %v3401_v26  ;;  %v3448_v25 = vld [vmem:[#allocation2 + $0x480] sm:$0xff]   ;;  %v623_v26 = vpack.c.bf16 %v587_v18, %v587_v18 }
 0x200   : > { %3095 = vmatprep.subr.bf16.mxu1 %v3403_v27  ;;  %v3449_v27 = vld [vmem:[#allocation2 + $0x448] sm:$0xff]   ;;  %v3493_v18 = vld [vmem:[#allocation2 + $0x560] sm:$0xff]  }
 0x202   : > { %3074 = vmatpush3.bf16.msra.mxu0 %v3402_v28  ;;  %v626_v28 = vpack.c.bf16 %v593_v21, %v593_v21  ;;  %v3494_v21 = vld [vmem:[#allocation2 + $0x520] sm:$0xff]  }
 0x203   : > { %3096 = vmatpush3.bf16.msra.mxu1 %v3404_v29  ;;  %3075 = vmatprep.subr.bf16.mxu0 %v3405_v30  ;;  %v3451_v29 = vld [vmem:[#allocation2 + $0x4c8] sm:$0xff]   ;;  %v628_v30 = vpack.c.bf16 %v598_v23, %v598_v23 }
 0x204   : > { %3097 = vmatprep.subr.bf16.mxu1 %v3407_v31  ;;  %v3450_v31 = vld [vmem:[#allocation2 + $0x408] sm:$0xff]  }
 0x205   : > { %v3497_v23 = vld [vmem:[#allocation2 + $0x568] sm:$0xff]  }
 0x206   : > { %3076 = vmatpush3.bf16.msra.mxu0 %v3406_v32  ;;  %v3452_v32 = vld [vmem:[#allocation2 + $0x488] sm:$0xff]  }
 0x207   : > { %3098 = vmatpush3.bf16.msra.mxu1 %v3408_v33  ;;  %3077 = vmatprep.subr.bf16.mxu0 %v3409_v34  ;;  %v3453_v33 = vld [vmem:[#allocation2 + $0x450] sm:$0xff]  }
 0x208   : > { %3099 = vmatprep.subr.bf16.mxu1 %v3411_v35  ;;  %v3455_v34 = vld [vmem:[#allocation2 + $0x4d0] sm:$0xff]  }
 0x209   : > { %v3454_v35 = vld [vmem:[#allocation2 + $0x410] sm:$0xff]  }
 0x20a   : > { %3078 = vmatpush3.bf16.msra.mxu0 %v3410_v36  ;;  %v3456_v36 = vld [vmem:[#allocation2 + $0x490] sm:$0xff]  }
 0x20b   : > { %3100 = vmatpush3.bf16.msra.mxu1 %v3412_v17  ;;  %3107 = vmatprep.subr.bf16.mxu0 %v3413_v38  ;;  %v3457_v17 = vld [vmem:[#allocation2 + $0x458] sm:$0xff]  }
 0x20c   : > { %3129 = vmatprep.subr.bf16.mxu1 %v3415_v40  ;;  %v3458_v38 = vld [vmem:[#allocation2 + $0x418] sm:$0xff]   ;;  %v3461_v40 = vld [vmem:[#allocation2 + $0x460] sm:$0xff]  }
 0x20d   : > { %2362 = vmatmul.mubr.bf16.vlgmr.msra.gmra.mrb[12].mxu0 %v617_v44  ;;  %v3465_v44 = vld [vmem:[#allocation2 + $0x468] sm:$0xff]  }
 0x20e   : > { %2402 = vmatmul.mubr.bf16.vlgmr.msra.gmra.mrb[12].mxu1 %v619_v46  ;;  %3108 = vmatpush3.bf16.msra.mxu0 %v3414_v42  ;;  %v3462_v42 = vld [vmem:[#allocation2 + $0x420] sm:$0xff]   ;;  %v3466_v46 = vld [vmem:[#allocation2 + $0x428] sm:$0xff]  }
 0x20f   : > { %2441 = vmatprep.mubr.bf16.mxu0 %v622_v48  ;;  %3130 = vmatpush3.bf16.msra.mxu1 %v3416_v45  ;;  %v3467_v45 = vld [vmem:[#allocation2 + $0x4e8] sm:$0xff]   ;;  %v3469_v48 = vld [vmem:[#allocation2 + $0x470] sm:$0xff]  }
 0x210   : > { %2481 = vmatprep.mubr.bf16.mxu1 %v624_v50  ;;  %3109 = vmatprep.subr.bf16.mxu0 %v3417_v47  ;;  %v3468_v47 = vld [vmem:[#allocation2 + $0x4a8] sm:$0xff]   ;;  %v3470_v50 = vld [vmem:[#allocation2 + $0x430] sm:$0xff]  }
 0x211   : > { %3131 = vmatprep.subr.bf16.mxu1 %v3419_v49  ;;  %v3471_v49 = vld [vmem:[#allocation2 + $0x4f0] sm:$0xff]  }
 0x212   : > { %3110 = vmatpush3.bf16.msra.mxu0 %v3418_v51  ;;  %v3472_v51 = vld [vmem:[#allocation2 + $0x4b0] sm:$0xff]  }
 0x213   : > { %3132 = vmatpush3.bf16.msra.mxu1 %v3420_v52  ;;  %3111 = vmatprep.subr.bf16.mxu0 %v3421_v53  ;;  %v3473_v52 = vld [vmem:[#allocation2 + $0x478] sm:$0xff]  }
 0x214   : > { %3133 = vmatprep.subr.bf16.mxu1 %v3423_v54  ;;  %v3475_v53 = vld [vmem:[#allocation2 + $0x4f8] sm:$0xff]  }
 0x215   : > { %v3474_v54 = vld [vmem:[#allocation2 + $0x438] sm:$0xff]  }
 0x216   : > { %3112 = vmatpush3.bf16.msra.mxu0 %v3422_v55  ;;  %v3476_v55 = vld [vmem:[#allocation2 + $0x4b8] sm:$0xff]  }
 0x217   : > { %3134 = vmatpush3.bf16.msra.mxu1 %v3424_v56  ;;  %3113 = vmatprep.subr.bf16.mxu0 %v3425_v57  ;;  %v592_v56 = vrot.slane %v3841_v19, 5  ;;  %v3477_v57 = vld [vmem:[#allocation2 + $0x540] sm:$0xff]  }
 0x218   : > { %3135 = vmatprep.subr.bf16.mxu1 %v3427_v58  ;;  %v597_v58 = vrot.slane %v3837_v13, 6 }
 0x21a   : > { %3114 = vmatpush3.bf16.msra.mxu0 %v3426_v59  ;;  %v3479_v59 = vld [vmem:[#allocation2 + $0x5c0] sm:$0xff]  }
 0x21b   : > { %3136 = vmatpush3.bf16.msra.mxu1 %v3428_v60  ;;  %3115 = vmatprep.subr.bf16.mxu0 %v3429_v61  ;;  %v603_v60 = vrot.slane %v3837_v13, 7  ;;  %v3478_v61 = vld [vmem:[#allocation2 + $0x500] sm:$0xff]   ;;  %v3484_v13 = vld [vmem:[#allocation2 + $0x588] sm:$0xff]  }
 0x21c   : > { %3137 = vmatprep.subr.bf16.mxu1 %v3431_v62  ;;  %v605_v62 = vrot.slane %v3839_v15, 7 }
 0x21e   : > { %3116 = vmatpush3.bf16.msra.mxu0 %v3430_v63  ;;  %v625_v63 = vpack.c.bf16 %v592_v56, %v592_v56 }
 0x21f   : > { %3138 = vmatpush3.bf16.msra.mxu1 %v3432_v0  ;;  %3117 = vmatprep.subr.bf16.mxu0 %v3433_v1  ;;  %v3480_v0 = vld [vmem:[#allocation2 + $0x580] sm:$0xff]   ;;  %v627_v1 = vpack.c.bf16 %v597_v58, %v597_v58 }
 0x220   : > { %3139 = vmatprep.subr.bf16.mxu1 %v3435_v2  ;;  %v3481_v2 = vld [vmem:[#allocation2 + $0x548] sm:$0xff]  }
 0x222   : > { %3118 = vmatpush3.bf16.msra.mxu0 %v3434_v3  ;;  %v630_v3 = vpack.c.bf16 %v603_v60, %v603_v60 }
 0x223   : > { %3140 = vmatpush3.bf16.msra.mxu1 %v3436_v4  ;;  %3119 = vmatprep.subr.bf16.mxu0 %v3437_v5  ;;  %v3483_v4 = vld [vmem:[#allocation2 + $0x5c8] sm:$0xff]   ;;  %v632_v5 = vpack.c.bf16 %v605_v62, %v605_v62 }
 0x224   : > { %3141 = vmatprep.subr.bf16.mxu1 %v3439_v6  ;;  %v3482_v6 = vld [vmem:[#allocation2 + $0x508] sm:$0xff]  }
 0x226   : > { %3120 = vmatpush3.bf16.msra.mxu0 %v3438_v7  ;;  %v3485_v7 = vld [vmem:[#allocation2 + $0x550] sm:$0xff]  }
 0x227   : > { %3142 = vmatpush3.bf16.msra.mxu1 %v3440_v8  ;;  %3121 = vmatprep.subr.bf16.mxu0 %v3441_v9  ;;  %v3487_v8 = vld [vmem:[#allocation2 + $0x5d0] sm:$0xff]  }
 0x228   : > { %3143 = vmatprep.subr.bf16.mxu1 %v3443_v10  ;;  %v3486_v9 = vld [vmem:[#allocation2 + $0x510] sm:$0xff]  }
 0x229   : > { %v3488_v10 = vld [vmem:[#allocation2 + $0x590] sm:$0xff]  }
 0x22a   : > { %3122 = vmatpush3.bf16.msra.mxu0 %v3442_v11  ;;  %v3489_v11 = vld [vmem:[#allocation2 + $0x558] sm:$0xff]  }
 0x22b   : > { %3144 = vmatpush3.bf16.msra.mxu1 %v3444_v12  ;;  %3151 = vmatprep.subr.bf16.mxu0 %v3445_v16  ;;  %v3491_v12 = vld [vmem:[#allocation2 + $0x5d8] sm:$0xff]  }
 0x22c   : > { %3173 = vmatprep.subr.bf16.mxu1 %v3447_v20  ;;  %v3492_v16 = vld [vmem:[#allocation2 + $0x598] sm:$0xff]   ;;  %v3495_v20 = vld [vmem:[#allocation2 + $0x5e0] sm:$0xff]  }
 0x22d   : > { %2442 = vmatmul.mubr.bf16.vlgmr.msra.gmra.mrb[16].mxu0 %v621_v24  ;;  %v3499_v24 = vld [vmem:[#allocation2 + $0x5e8] sm:$0xff]  }
 0x22e   : > { %2482 = vmatmul.mubr.bf16.vlgmr.msra.gmra.mrb[16].mxu1 %v623_v26  ;;  %3152 = vmatpush3.bf16.msra.mxu0 %v3446_v22  ;;  %v3496_v22 = vld [vmem:[#allocation2 + $0x5a0] sm:$0xff]   ;;  %v3500_v26 = vld [vmem:[#allocation2 + $0x5a8] sm:$0xff]  }
 0x22f   : > { %2521 = vmatprep.mubr.bf16.mxu0 %v626_v28  ;;  %3174 = vmatpush3.bf16.msra.mxu1 %v3448_v25  ;;  %v3498_v25 = vld [vmem:[#allocation2 + $0x528] sm:$0xff]   ;;  %v3503_v28 = vld [vmem:[#allocation2 + $0x5f0] sm:$0xff]  }
 0x230   : > { %2561 = vmatprep.mubr.bf16.mxu1 %v628_v30  ;;  %3153 = vmatprep.subr.bf16.mxu0 %v3449_v27  ;;  %v3501_v27 = vld [vmem:[#allocation2 + $0x570] sm:$0xff]  }
 0x231   : > { %3175 = vmatprep.subr.bf16.mxu1 %v3451_v29  ;;  %v3502_v29 = vld [vmem:[#allocation2 + $0x530] sm:$0xff]  }
 0x232   : > { %3154 = vmatpush3.bf16.msra.mxu0 %v3450_v31  ;;  %v3504_v30 = vld [vmem:[#allocation2 + $0x5b0] sm:$0xff]   ;;  %v3505_v31 = vld [vmem:[#allocation2 + $0x578] sm:$0xff]  }
 0x233   : > { %3176 = vmatpush3.bf16.msra.mxu1 %v3452_v32  ;;  %3155 = vmatprep.subr.bf16.mxu0 %v3453_v33  ;;  %v3507_v32 = vld [vmem:[#allocation2 + $0x5f8] sm:$0xff]  }
 0x234   : > { %3177 = vmatprep.subr.bf16.mxu1 %v3455_v34  ;;  %v3506_v33 = vld [vmem:[#allocation2 + $0x538] sm:$0xff]  }
 0x235   : > { %v3508_v34 = vld [vmem:[#allocation2 + $0x5b8] sm:$0xff]  }
 0x236   : > { %3156 = vmatpush3.bf16.msra.mxu0 %v3454_v35  ;;  %v599_v35 = vrot.slane %v3839_v15, 6 }
 0x237   : > { %3178 = vmatpush3.bf16.msra.mxu1 %v3456_v36  ;;  %3157 = vmatprep.subr.bf16.mxu0 %v3457_v17  ;;  %v604_v36 = vrot.slane %v3841_v19, 7 }
 0x238   : > { %3179 = vmatprep.subr.bf16.mxu1 %v3459_v37  ;;  %v629_v17 = vpack.c.bf16 %v599_v35, %v599_v35 }
 0x239   : > { %v631_v37 = vpack.c.bf16 %v604_v36, %v604_v36 }
 0x23a   : > { %3158 = vmatpush3.bf16.msra.mxu0 %v3458_v38 }
 0x23b   : > { %3180 = vmatpush3.bf16.msra.mxu1 %v3460_v39  ;;  %3159 = vmatprep.subr.bf16.mxu0 %v3461_v40  ;;  %v280_v39 = vld [vmem:[%s3927_s4] sm:$0x1] }
 0x23c   : > { %3181 = vmatprep.subr.bf16.mxu1 %v3463_v41 }
 0x23e   : > { %3160 = vmatpush3.bf16.msra.mxu0 %v3462_v42 }
 0x23f   : > { %3182 = vmatpush3.bf16.msra.mxu1 %v3464_v43  ;;  %3161 = vmatprep.subr.bf16.mxu0 %v3465_v44 }
 0x240   : > { %3183 = vmatprep.subr.bf16.mxu1 %v3467_v45 }
 0x242   : > { %3162 = vmatpush3.bf16.msra.mxu0 %v3466_v46 }
 0x243   : > { %3184 = vmatpush3.bf16.msra.mxu1 %v3468_v47  ;;  %3163 = vmatprep.subr.bf16.mxu0 %v3469_v48 }
 0x244   : > { %3185 = vmatprep.subr.bf16.mxu1 %v3471_v49 }
 0x246   : > { %3164 = vmatpush3.bf16.msra.mxu0 %v3470_v50 }
 0x247   : > { %3186 = vmatpush3.bf16.msra.mxu1 %v3472_v51  ;;  %3165 = vmatprep.subr.bf16.mxu0 %v3473_v52 }
 0x248   : > { %3187 = vmatprep.subr.bf16.mxu1 %v3475_v53 }
 0x24a   : > { %3166 = vmatpush3.bf16.msra.mxu0 %v3474_v54 }
 0x24b   : > { %3188 = vmatpush3.bf16.msra.mxu1 %v3476_v55  ;;  %3195 = vmatprep.subr.bf16.mxu0 %v3477_v57 }
 0x24c   : > { %3217 = vmatprep.subr.bf16.mxu1 %v3479_v59 }
 0x24d   : > { %2522 = vmatmul.mubr.bf16.vlgmr.msra.gmra.mrb[20].mxu0 %v625_v63 }
 0x24e   : > { %2562 = vmatmul.mubr.bf16.vlgmr.msra.gmra.mrb[20].mxu1 %v627_v1  ;;  %3196 = vmatpush3.bf16.msra.mxu0 %v3478_v61 }
 0x24f   : > { %2601 = vmatprep.mubr.bf16.mxu0 %v630_v3  ;;  %3218 = vmatpush3.bf16.msra.mxu1 %v3480_v0 }
 0x250   : > { %2641 = vmatprep.mubr.bf16.mxu1 %v632_v5  ;;  %3197 = vmatprep.subr.bf16.mxu0 %v3481_v2 }
 0x251   : > { %3219 = vmatprep.subr.bf16.mxu1 %v3483_v4 }
 0x252   : > { %3198 = vmatpush3.bf16.msra.mxu0 %v3482_v6 }
 0x253   : > { %3220 = vmatpush3.bf16.msra.mxu1 %v3484_v13  ;;  %3199 = vmatprep.subr.bf16.mxu0 %v3485_v7 }
 0x254   : > { %3221 = vmatprep.subr.bf16.mxu1 %v3487_v8 }
 0x256   : > { %3200 = vmatpush3.bf16.msra.mxu0 %v3486_v9 }
 0x257   : > { %3222 = vmatpush3.bf16.msra.mxu1 %v3488_v10  ;;  %3201 = vmatprep.subr.bf16.mxu0 %v3489_v11 }
 0x258   : > { %3223 = vmatprep.subr.bf16.mxu1 %v3491_v12 }
 0x25a   : > { %3202 = vmatpush3.bf16.msra.mxu0 %v3490_v14 }
 0x25b   : > { %3224 = vmatpush3.bf16.msra.mxu1 %v3492_v16  ;;  %3203 = vmatprep.subr.bf16.mxu0 %v3493_v18 }
 0x25c   : > { %3225 = vmatprep.subr.bf16.mxu1 %v3495_v20 }
 0x25e   : > { %3204 = vmatpush3.bf16.msra.mxu0 %v3494_v21 }
 0x25f   : > { %3226 = vmatpush3.bf16.msra.mxu1 %v3496_v22  ;;  %3205 = vmatprep.subr.bf16.mxu0 %v3497_v23 }
 0x260   : > { %3227 = vmatprep.subr.bf16.mxu1 %v3499_v24 }
 0x262   : > { %3206 = vmatpush3.bf16.msra.mxu0 %v3498_v25 }
 0x263   : > { %3228 = vmatpush3.bf16.msra.mxu1 %v3500_v26  ;;  %3207 = vmatprep.subr.bf16.mxu0 %v3501_v27 }
 0x264   : > { %3229 = vmatprep.subr.bf16.mxu1 %v3503_v28 }
 0x266   : > { %3208 = vmatpush3.bf16.msra.mxu0 %v3502_v29 }
 0x267   : > { %3230 = vmatpush3.bf16.msra.mxu1 %v3504_v30  ;;  %3209 = vmatprep.subr.bf16.mxu0 %v3505_v31 }
 0x268   : > { %3231 = vmatprep.subr.bf16.mxu1 %v3507_v32 }
 0x26a   : > { %3210 = vmatpush3.bf16.msra.mxu0 %v3506_v33 }
 0x26b   : > { %3232 = vmatpush3.bf16.msra.mxu1 %v3508_v34 }
 0x26d   : > { %2602 = vmatmul.mubr.bf16.vlgmr.msra.gmra.mrb[24].mxu0 %v629_v17 }
 0x26e   : > { %2642 = vmatmul.mubr.bf16.vlgmr.msra.gmra.mrb[24].mxu1 %v631_v37 }
 0x2a0   : > { %v2991_v38 = vpop.f32.mrb[4].mxu0 }
 0x2a1   : > { %v2992_v40 = vpop.f32.mrb[5].mxu0  ;;  %v3013_v41 = vpop.f32.mrb[4].mxu1 }
 0x2a2   : > { %v2993_v42 = vadd.f32 %v2992_v40, %v2991_v38  ;;  %v2994_v43 = vpop.f32.mrb[6].mxu0  ;;  %v3014_v44 = vpop.f32.mrb[5].mxu1 }
 0x2a3   : > { %v3015_v15 = vadd.f32 %v3014_v44, %v3013_v41  ;;  %v2995_v45 = vpop.f32.mrb[7].mxu0  ;;  %v3016_v46 = vpop.f32.mrb[6].mxu1 }
 0x2a4   : > { %v2204_v19 = vadd.f32 %v2993_v42, %v280_v39  ;;  %v3017_v47 = vpop.f32.mrb[7].mxu1 }
 0x2a6   : > { %v2244_v48 = vadd.f32 %v3015_v15, %v2204_v19 }
 0x2c0   : > { %v3035_v49 = vpop.f32.mrb[8].mxu0 }
 0x2c1   : > { %v3036_v50 = vpop.f32.mrb[9].mxu0  ;;  %v3057_v51 = vpop.f32.mrb[8].mxu1 }
 0x2c2   : > { %v3037_v52 = vadd.f32 %v3036_v50, %v3035_v49  ;;  %v3038_v53 = vpop.f32.mrb[10].mxu0  ;;  %v3058_v54 = vpop.f32.mrb[9].mxu1 }
 0x2c3   : > { %v3059_v55 = vadd.f32 %v3058_v54, %v3057_v51  ;;  %v3039_v56 = vpop.f32.mrb[11].mxu0  ;;  %v3060_v57 = vpop.f32.mrb[10].mxu1 }
 0x2c4   : > { %v2284_v58 = vadd.f32 %v3037_v52, %v2244_v48  ;;  %v3061_v59 = vpop.f32.mrb[11].mxu1 }
 0x2c6   : > { %v2324_v60 = vadd.f32 %v3059_v55, %v2284_v58 }
 0x2e0   : > { %v3079_v61 = vpop.f32.mrb[12].mxu0 }
 0x2e1   : > { %v3080_v62 = vpop.f32.mrb[13].mxu0  ;;  %v3101_v63 = vpop.f32.mrb[12].mxu1 }
 0x2e2   : > { %v3081_v0 = vadd.f32 %v3080_v62, %v3079_v61  ;;  %v3082_v1 = vpop.f32.mrb[14].mxu0  ;;  %v3102_v2 = vpop.f32.mrb[13].mxu1 }
 0x2e3   : > { %v3103_v3 = vadd.f32 %v3102_v2, %v3101_v63  ;;  %v3083_v4 = vpop.f32.mrb[15].mxu0  ;;  %v3104_v5 = vpop.f32.mrb[14].mxu1 }
 0x2e4   : > { %v2364_v6 = vadd.f32 %v3081_v0, %v2324_v60  ;;  %v3105_v13 = vpop.f32.mrb[15].mxu1 }
 0x2e6   : > { %v2404_v7 = vadd.f32 %v3103_v3, %v2364_v6 }
 0x300   : > { %v3123_v8 = vpop.f32.mrb[16].mxu0 }
 0x301   : > { %v3124_v9 = vpop.f32.mrb[17].mxu0  ;;  %v3145_v10 = vpop.f32.mrb[16].mxu1 }
 0x302   : > { %v3125_v11 = vadd.f32 %v3124_v9, %v3123_v8  ;;  %v3126_v12 = vpop.f32.mrb[18].mxu0  ;;  %v3146_v14 = vpop.f32.mrb[17].mxu1 }
 0x303   : > { %v3147_v16 = vadd.f32 %v3146_v14, %v3145_v10  ;;  %v3127_v18 = vpop.f32.mrb[19].mxu0  ;;  %v3148_v20 = vpop.f32.mrb[18].mxu1 }
 0x304   : > { %v2444_v21 = vadd.f32 %v3125_v11, %v2404_v7  ;;  %v3149_v22 = vpop.f32.mrb[19].mxu1 }
 0x306   : > { %v2484_v23 = vadd.f32 %v3147_v16, %v2444_v21 }
 0x320   : > { %v3167_v24 = vpop.f32.mrb[20].mxu0 }
 0x321   : > { %v3168_v25 = vpop.f32.mrb[21].mxu0  ;;  %v3189_v26 = vpop.f32.mrb[20].mxu1 }
 0x322   : > { %v3169_v27 = vadd.f32 %v3168_v25, %v3167_v24  ;;  %v3170_v28 = vpop.f32.mrb[22].mxu0  ;;  %v3190_v29 = vpop.f32.mrb[21].mxu1 }
 0x323   : > { %v3191_v30 = vadd.f32 %v3190_v29, %v3189_v26  ;;  %v3171_v31 = vpop.f32.mrb[23].mxu0  ;;  %v3192_v32 = vpop.f32.mrb[22].mxu1 }
 0x324   : > { %v2524_v33 = vadd.f32 %v3169_v27, %v2484_v23  ;;  %v3193_v34 = vpop.f32.mrb[23].mxu1 }
 0x326   : > { %v2564_v35 = vadd.f32 %v3191_v30, %v2524_v33 }
 0x340   : > { %v3211_v36 = vpop.f32.mrb[24].mxu0 }
 0x341   : > { %v3212_v17 = vpop.f32.mrb[25].mxu0  ;;  %v3233_v37 = vpop.f32.mrb[24].mxu1 }
 0x342   : > { %v3213_v38 = vadd.f32 %v3212_v17, %v3211_v36  ;;  %v3214_v39 = vpop.f32.mrb[26].mxu0  ;;  %v3234_v40 = vpop.f32.mrb[25].mxu1 }
 0x343   : > { %v3235_v41 = vadd.f32 %v3234_v40, %v3233_v37  ;;  %v3215_v42 = vpop.f32.mrb[27].mxu0  ;;  %v3236_v43 = vpop.f32.mrb[26].mxu1 }
 0x344   : > { %v2604_v44 = vadd.f32 %v3213_v38, %v2564_v35  ;;  %v3237_v15 = vpop.f32.mrb[27].mxu1 }
 0x346   : > { %v2644_v45 = vadd.f32 %v3235_v41, %v2604_v44 }
 0x348   : > { %2649 = vst [vmem:[%s266_s20] sm:$0x1] %v2644_v45 }
 0x349   : > { %3550 = shalt.err (!%p3547_p7)
}
 0x34a   : > { %s3551_s15 = scalar_lea.hbm %s3881_s10, 16  ;;  %s3555_s17 = scalar_lea.hbm %s3929_s6, 32 }
 0x34b   : > { %p3552_p8 = scmp.ne.s32.totalorder %s3881_s10, %s3551_s15  ;;  %p3556_p1 = scmp.lt.u32.totalorder %s3881_s10, %s3929_s6 }
 0x34c   : > { %p3557_p0 = scmp.lt.u32.totalorder %s3555_s17, %s3551_s15  ;;  %p3559_p6 = scmp.lt.u32.totalorder %s3551_s15, %s3881_s10 }
 0x34d   : > { %p3553_p11 = pnand %p3552_p8, %p3940_p9 }
 0x34e   : > { %p3558_p5 = por %p3557_p0, %p3556_p1 }
 0x34f   : > { %p3554_p13 = pneg %p3553_p11 }
 0x350   : > { %p3560_p10 = por %p3559_p6, %p3558_p5 }
 0x352   : > { %p3561_p12 = pnand %p3560_p10, %p3554_p13 }
 0x354   : > { %3564 = shalt.err (!%p3561_p12)
}
 0x355   : > { %3254 = dma.vmem_to_hbm [thread:$0]  (%p3940_p9), %s3883_s26, 16, %s3881_s10, %s2656_s11  }
 0x356 PF: > { %p3266_p2 = scmp.ge.s32.totalorder %s3603_s24, 2  ;;  %s2691_s20 = sand.u32 1, %s3591_s21  }
 0x357   : > { %p3941_p3 = scmp.ne.s32.totalorder %s3934_s8, 0  ;;  %s2692_s28 = scalar_lea.sflag [#allocation4], %s2691_s20 }
 0x359   : > { %p3261_p4 = pnand %p3266_p2, %p3941_p3 }
 0x35b   : > { %3586 = dma.done.wait (!%p3261_p4), %s2692_s28, 16  }
 0x35c   : > { %3588 = vsyncadd (!%p3261_p4), %s2692_s28, 4294967280  ;;  %p18_p7 = scmp.ge.s32.totalorder %s3681_s27, 4   ;;  %s3942_s21 = smov %s3595_s22 }
 0x35d   : > { %s3943_s22 = smov %s3599_s23  ;;  %s3944_s23 = smov %s3692_s30 }
 0x35e   : > { %s3945_s24 = smov %s3681_s27  ;;  %20 = sbr.rel (!%p18_p7) target bundleno = 4 (0x4), region = 92 }
 0x365   :  { %2696 = vsyncpa [#allocation3], 1 }
 0x366   :  { %2698 = vsyncpa [#allocation3 + $0x1], 1 }
 0x367   :  { %2699 = vsyncpa [#allocation4], 1 }
 0x368   :  { %2701 = vsyncpa [#allocation4 + $0x1], 1 }

// kernel: classification_model_forward.1
= control target key start
LH: loop header
LB: loop body
LE: loop exit
PB: predicated region body
PF: predicated region fallthrough
CT: control target
= control target key end

     0   :  { %12 = vsyncpa [#allocation3], 0  ;;  %s3923_s0 = inlined_call_operand.vmem [shape: bf16[2,4,512], index: 0, kind: input, shape index: {}]   ;;  %s3924_s1 = inlined_call_operand.vmem [shape: bf16[8,36], index: 1, kind: input, shape index: {}]   ;;  %s3925_s2 = inlined_call_operand.vmem [shape: f32[8,1], index: 2, kind: input, shape index: {}]   ;;  %s3926_s3 = inlined_call_operand.hbm [shape: bf16[3072,128], index: 3, kind: input, shape index: {}]   ;;  %s3927_s4 = inlined_call_operand.vmem [shape: f32[1,128], index: 4, kind: input, shape index: {}]   ;;  %s3928_s5 = inlined_call_operand.vmem [shape: f32[2,8,384], index: 5, kind: output, shape index: {0}]   ;;  %s3929_s6 = inlined_call_operand.hbm [shape: f32[2,1,128], index: 6, kind: output, shape index: {1}]  }
   0x1   :  { %13 = vsyncpa [#allocation4], 0 }
   0x2   :  { %15 = vsyncpa [#allocation4 + $0x1], 0  ;;  %s3656_s21 = smov 0   ;;  %s3658_s22 = smov 0  }
   0x3   :  { %s3660_s23 = smov 0   ;;  %s3662_s24 = smov 0  }
   0x4 LB: > { %s3677_s25 = sadd.s32 4294967295, %s3603_s24   ;;  %s2763_s26 = sadd.s32 4294967294, %s3603_s24   ;;  %s3603_s24 = sphi %s3662_s24, %s3945_s24   ;;  %s3599_s23 = sphi %s3660_s23, %s3944_s23   ;;  %s3595_s22 = sphi %s3658_s22, %s3943_s22   ;;  %s3591_s21 = sphi %s3656_s21, %s3942_s21  }
   0x5   : > { %s3681_s27 = sadd.s32 1, %s3603_s24   ;;  %s164_s28 = sadd.s32 1, %s3599_s23 }
   0x6   : > { %s161_s29 = ssub.s32 %s3603_s24, %s3681_s27  ;;  %p174_p0 = scmp.ne.s32.totalorder %s3599_s23, %s3595_s22 }
   0x7   : > { %p162_p1 = scmp.eq.s32.totalorder %s161_s29, 0  ;;  %p175_p2 = scmp.eq.s32.totalorder %s3677_s25, 1 }
   0x8   : > { %p180_p3 = scmp.ne.s32.totalorder %s3595_s22, %s3591_s21  ;;  %p181_p4 = scmp.eq.s32.totalorder %s2763_s26, 1 }
   0x9   : > { %s3692_s30 = scalar_select %p162_p1, %s3599_s23, %s164_s28  }
   0xa   : > { %p3694_p5 = por %p175_p2, %p174_p0  ;;  %p3698_p6 = por %p181_p4, %p180_p3 }
   0xb   : > { %p2764_p7 = scmp.ge.s32.totalorder %s3603_s24, 1  ;;  %p188_p8 = scmp.lt.s32.totalorder %s3603_s24, 3 }
   0xc   : > { %s3933_s7 = scalar_select %p3694_p5, 1, 0 }
   0xd   : > { %s3934_s8 = scalar_select %p3698_p6, 1, 0 }
   0xe   : > { %p3930_p9 = scmp.eq.s32.totalorder %s3677_s25, 0  ;;  %p3705_p10 = pnand %p2764_p7, %p188_p8 }
   0xf   : > { %s3605_s10 = smov [#allocation2]   ;;  %s3509_s15 = scalar_lea.hbm %s3926_s3, 24576 }
  0x10   : > { %s3935_s9 = scalar_select %p3705_p10, 1, 0 }
  0x11   : > { %s206_s11 = sshll.u32 %s3605_s10, 4  ;;  %p3256_p11 = pneg %p3705_p10  ;;  %s207_s11 = int_to_ptr.vmem [resolvable:$true] %s206_s11 }
  0x12   : > { %p3510_p13 = scmp.ne.s32.totalorder %s3926_s3, %s3509_s15  ;;  %p3516_p3 = scmp.lt.u32.totalorder %s3509_s15, %s3926_s3 }
  0x13   : > { %p3713_p12 = pnand %p3930_p9, %p3256_p11 }
  0x15   : > { %p3511_p0 = pneg %p3713_p12 }
  0x17   : > { %p3512_p1 = pnand %p3511_p0, %p3510_p13 }
  0x19   : > { %p3513_p2 = pneg %p3512_p1 }
  0x1b   : > { %p3518_p4 = pnand %p3516_p3, %p3513_p2 }
  0x1d   : > { %3521 = shalt.err (!%p3518_p4)
}
  0x1e   : > { %s3522_s20 = scalar_lea.vmem %s207_s11, 24576  ;;  %p3530_p9 = scmp.lt.s32.totalorder %s207_s11, %s207_s11 }
  0x1f   : > { %p3523_p7 = scmp.ne.s32.totalorder %s207_s11, %s3522_s20  ;;  %p3531_p6 = scmp.lt.s32.totalorder %s3522_s20, %s3522_s20 }
  0x21   : > { %p3525_p8 = pnand %p3523_p7, %p3511_p0  ;;  %p3532_p5 = por %p3531_p6, %p3530_p9 }
  0x23   : > { %p3526_p11 = pneg %p3525_p8 }
  0x25   : > { %p3533_p10 = pnand %p3532_p5, %p3526_p11 }
  0x27   : > { %3536 = shalt.err (!%p3533_p10)
}
  0x28   : > { %s3606_s26 = smov 64   ;;  %s3607_s28 = smov 4  }
  0x29   : > { %3259 = dma.hbm_to_vmem [thread:$0]  (!%p3713_p12), %s3926_s3, 24576, %s207_s11, [#allocation3], %s3606_s26, %s3606_s26, %s3607_s28  }
  0x2a   : > { %p3937_p13 = scmp.ne.s32.totalorder %s3935_s9, 0 }
  0x2b   : > { %p3938_p1 = scmp.eq.s32.totalorder (!%p3937_p13), %s3677_s25, 0 }
  0x2c   : > { %233 = sbr.rel (%p3937_p13) target bundleno = 854 (0x356), region = 40 }
  0x33   : > { %3582 = dma.done.wait (%p3938_p1), [#allocation3], 24576   ;;  %p3939_p0 = pmov %p3938_p1 }
  0x34   : > { %p267_p5 = scmp.lt.s32.totalorder %s3677_s25, 1  ;;  %v287_v0 = vlaneseq  ;;  %v3608_v1 = vmov 1983009808   ;;  %s3609_s15 = smov 126   ;;  %v3615_v17 = vmov 0.0   ;;  %v3617_v19 = vmov 0  }
  0x35   : > { %3584 = vsyncadd (%p3939_p0), [#allocation3], 4294942720  ;;  %v285_v2 = vunpack.c.l.s4 %v3608_v1  ;;  %s3610_s16 = smov 127   ;;  %s3611_s17 = smov 110   ;;  %3239 = vmatprep.subr.bf16.mxu1 %v3615_v17  ;;  %509 = vmatprep.mubr.bf16.mxu0 %v3617_v19  ;;  %vm3618_vm0 = vmmov 0   ;;  %v279_v20 = vld [vmem:[%s3925_s2] sm:$0xff] }
  0x36   : > { %s3741_s12 = scalar_select %p267_p5, %s3677_s25, 1  ;;  %v288_v3 = vshrl.u32 %v287_v0, 7  ;;  %3314 = vset.pattern.permute.xlu0 %v3617_v19  ;;  %3245 = vmatprep.mubr.msk.bf16.mxu1 %vm3618_vm0, %v3615_v17  ;;  %vm316_vm1 = vcmask 1039360   ;;  %vm408_vm2 = vcmask 1041408   ;;  %vm343_vm3 = vcmask 900096  }
  0x37   : > { %v286_v4 = vunpack.c.0.s8 %v285_v2  ;;  %s3612_s18 = smov 109   ;;  %s3613_s19 = smov 108   ;;  %vm330_vm4 = vcmask 1031168   ;;  %vm425_vm5 = vcmask 1045504   ;;  %vm418_vm6 = vcmask 1043456  }
  0x38   : > { %s2970_s11 = sshll.u32 %s3741_s12, 3  ;;  %s3614_s20 = smov 92   ;;  %vm368_vm7 = vcmask 883712   ;;  %vm380_vm8 = vcmask 752640   ;;  %vm356_vm9 = vcmask 891904   ;;  %vm392_vm10 = vcmask 744448  }
  0x39   : > { %s271_s14 = scalar_lea.vmem %s3923_s0, %s2970_s11  ;;  %v289_v5 = vsub.s32 %v286_v4, %v288_v3  ;;  %s3616_s26 = smov 91   ;;  %vm404_vm11 = vcmask 736256   ;;  %vm464_vm12 = vcmask 293888  }
  0x3a   : > { %v281_v6 = vld [vmem:[%s271_s14] sm:$0xff]  ;;  %s3619_s28 = smov 90   ;;  %s3249_s13 = smul.u32 24, %s3741_s12 }
  0x3b   : > { %v3747_v7 = vrot.slane %v281_v6, %v289_v5  ;;  %v299_v8 = vcombine.low %v281_v6, %v281_v6  ;;  %v283_v10 = vcombine.high %v281_v6, %v281_v6  ;;  %p3940_p9 = scmp.ne.s32.totalorder %s3933_s7, 0 }
  0x3d   : > { %324 = vrot.lane.b32.xlu1 %v3747_v7, %s3609_s15  ;;  %312 = vrot.lane.b32.xlu0 %v3747_v7, %s3610_s16  ;;  %v306_v9 = vrot.slane %v299_v8, %v289_v5  ;;  %v320_v12 = vcombine.low %v3747_v7, %v3747_v7  ;;  %v3755_v13 = vrot.slane %v283_v10, %v289_v5 }
  0x3e   : > { %v298_v15 = vcombine.high %v3747_v7, %v3747_v7 }
  0x3f   : > { %v307_v11 = vcombine.high %v306_v9, %v306_v9  ;;  %v321_v14 = vcombine.low %v3755_v13, %v3755_v13  ;;  %v334_v16 = vcombine.low %v306_v9, %v306_v9  ;;  %v347_v18 = vcombine.high %v3755_v13, %v3755_v13 }
  0x41   : > { %308 = vrot.lane.b32.xlu1 %v306_v9, %s3610_s16  ;;  %337 = vrot.lane.b32.xlu0 %v306_v9, %s3611_s17 }
  0x45   : > { %310 = vrot.lane.b32.xlu0 %v307_v11, %s3610_s16  ;;  %322 = vrot.lane.b32.xlu1 %v320_v12, %s3609_s15 }
  0x49   : > { %339 = vrot.lane.b32.xlu1 %v320_v12, %s3611_s17  ;;  %326 = vrot.lane.b32.xlu0 %v321_v14, %s3609_s15 }
  0x4d   : > { %350 = vrot.lane.b32.xlu1 %v298_v15, %s3612_s18  ;;  %335 = vrot.lane.b32.xlu0 %v334_v16, %s3611_s17 }
  0x51   : > { %362 = vrot.lane.b32.xlu1 %v307_v11, %s3613_s19  ;;  %352 = vrot.lane.b32.xlu0 %v3755_v13, %s3612_s18 }
  0x55   : > { %314 = vrot.lane.b32.xlu1 %v298_v15, %s3610_s16  ;;  %364 = vrot.lane.b32.xlu0 %v3747_v7, %s3613_s19  ;;  %s276_s16 = scalar_lea.vmem %s3928_s5, %s3249_s13 }
  0x59   : > { %360 = vrot.lane.b32.xlu1 %v306_v9, %s3613_s19  ;;  %348 = vrot.lane.b32.xlu0 %v3747_v7, %s3612_s18 }
  0x5d   : > { %376 = vrot.lane.b32.xlu1 %v321_v14, %s3614_s20  ;;  %374 = vrot.lane.b32.xlu0 %v3747_v7, %s3614_s20 }
  0x61   : > { %372 = vrot.lane.b32.xlu1 %v320_v12, %s3614_s20  ;;  %328 = vrot.lane.b32.xlu0 %v3755_v13, %s3609_s15 }
  0x65   : > { %388 = vrot.lane.b32.xlu1 %v320_v12, %s3616_s26  ;;  %386 = vrot.lane.b32.xlu0 %v306_v9, %s3616_s26 }
  0x69   : > { %384 = vrot.lane.b32.xlu1 %v334_v16, %s3616_s26  ;;  %341 = vrot.lane.b32.xlu0 %v3747_v7, %s3611_s17 }
  0x6d   : > { %366 = vrot.lane.b32.xlu1 %v298_v15, %s3613_s19  ;;  %354 = vrot.lane.b32.xlu0 %v347_v18, %s3612_s18  ;;  %s265_s18 = sand.u32 1, %s3595_s22   ;;  %s2967_s19 = sshll.u32 %s3677_s25, 4 }
  0x6e   : > { %s3881_s10 = scalar_lea.hbm %s3929_s6, %s2967_s19  ;;  %s2656_s11 = scalar_lea.sflag [#allocation4], %s265_s18 }
  0x6f   : > { %s3620_s25 = smov [#allocation5]  }
  0x70   : > { %s3541_s13 = sshll.u32 %s3620_s25, 4  ;;  %s3542_s13 = int_to_ptr.vmem [resolvable:$false] %s3541_s13 }
  0x71   : > { %390 = vrot.lane.b32.xlu1 %v3747_v7, %s3616_s26  ;;  %378 = vrot.lane.b32.xlu0 %v3755_v13, %s3614_s20  ;;  %s266_s20 = scalar_lea.vmem [#allocation5], %s265_s18  ;;  %s3543_s14 = scalar_lea.vmem %s3542_s13, 32 }
  0x72   : > { %s2671_s26 = sshll.u32 %s266_s20, 4  ;;  %s3883_s26 = int_to_ptr.vmem [resolvable:$true] %s2671_s26 }
  0x73   : > { %s3537_s9 = scalar_lea.vmem %s3883_s26, 16  ;;  %p3544_p2 = scmp.lt.s32.totalorder %s3883_s26, %s3542_s13 }
  0x74   : > { %p3538_p6 = scmp.ne.s32.totalorder %s3883_s26, %s3537_s9  ;;  %p3545_p3 = scmp.lt.s32.totalorder %s3543_s14, %s3537_s9 }
  0x75   : > { %398 = vrot.lane.b32.xlu1 %v298_v15, %s3619_s28  ;;  %396 = vrot.lane.b32.xlu0 %v3747_v7, %s3619_s28 }
  0x76   : > { %p3539_p10 = pnand %p3538_p6, %p3940_p9  ;;  %p3546_p4 = por %p3545_p3, %p3544_p2 }
  0x78   : > { %p3540_p12 = pneg %p3539_p10 }
  0x79   : > { %402 = vrot.lane.b32.xlu1 %v347_v18, %s3619_s28  ;;  %400 = vrot.lane.b32.xlu0 %v3755_v13, %s3619_s28 }
  0x7a   : > { %p3547_p7 = pnand %p3546_p4, %p3540_p12 }
  0x7d   : > { %461 = vperm.xlu0 %3314, %v279_v20  }
  0xaf   : > { %v325_v21 = vpop.permute.xlu1 %324  ;;  %v313_v22 = vpop.permute.xlu0 %312 }
  0xb3   : > { %v309_v23 = vpop.permute.xlu1 %308  ;;  %v338_v24 = vpop.permute.xlu0 %337 }
  0xb7   : > { %v311_v25 = vpop.permute.xlu0 %310  ;;  %v323_v26 = vpop.permute.xlu1 %322 }
  0xb8   : > { %v318_v27 = vsel %vm316_vm1, %v311_v25, %v313_v22  ;;  %v317_v28 = vsel %vm316_vm1, %v309_v23, %v311_v25  ;;  %v331_v35 = vsel %vm330_vm4, %v323_v26, %v325_v21 }
  0xb9   : > { %v414_v31 = vsel %vm408_vm2, %v298_v15, %v318_v27  ;;  %v411_v34 = vsel %vm408_vm2, %v3747_v7, %v317_v28 }
  0xba   : > { %v420_v41 = vsel %vm418_vm6, %v411_v34, %v331_v35 }
  0xbb   : > { %v340_v29 = vpop.permute.xlu1 %339  ;;  %v327_v30 = vpop.permute.xlu0 %326 }
  0xbc   : > { %v345_v32 = vsel %vm343_vm3, %v338_v24, %v340_v29  ;;  %v332_v33 = vsel %vm330_vm4, %v325_v21, %v327_v30 }
  0xbd   : > { %v422_v36 = vsel %vm418_vm6, %v414_v31, %v332_v33  ;;  %v3319_v31 = vld [vmem:[#allocation2 + $0xc0] sm:$0xff]  }
  0xbe   : > { %v430_v37 = vsel %vm425_vm5, %v422_v36, %v345_v32  ;;  %v278_v36 = vld [vmem:[%s3924_s1] sm:$0xf] }
  0xbf   : > { %v351_v38 = vpop.permute.xlu1 %350  ;;  %477 = vmatprep.subr.bf16.mxu0 %v430_v37  ;;  %v336_v39 = vpop.permute.xlu0 %335  ;;  %v3320_v37 = vld [vmem:[#allocation2 + $0x80] sm:$0xff]  }
  0xc0   : > { %v344_v40 = vsel %vm343_vm3, %v336_v39, %v338_v24  ;;  %v3323_v39 = vld [vmem:[#allocation2 + $0xc8] sm:$0xff]  }
  0xc1   : > { %v427_v42 = vsel %vm425_vm5, %v420_v41, %v344_v40  ;;  %v3322_v40 = vld [vmem:[#allocation2 + $0x8] sm:$0xff]  }
  0xc2   : > { %478 = vmatpush1.bf16.msra.mxu0 %v427_v42  ;;  %v3324_v41 = vld [vmem:[#allocation2 + $0x88] sm:$0xff]   ;;  %v3325_v42 = vld [vmem:[#allocation2 + $0x50] sm:$0xff]  }
  0xc3   : > { %v363_v43 = vpop.permute.xlu1 %362  ;;  %v353_v44 = vpop.permute.xlu0 %352 }
  0xc4   : > { %v358_v55 = vsel %vm356_vm9, %v351_v38, %v353_v44 }
  0xc7   : > { %v315_v45 = vpop.permute.xlu1 %314  ;;  %v365_v46 = vpop.permute.xlu0 %364 }
  0xc8   : > { %v370_v53 = vsel %vm368_vm7, %v363_v43, %v365_v46  ;;  %v319_v56 = vsel %vm316_vm1, %v313_v22, %v315_v45  ;;  %v3328_v45 = vld [vmem:[#allocation2 + $0x90] sm:$0xff]  }
  0xc9   : > { %v440_v57 = vsel %vm408_vm2, %v358_v55, %v370_v53  ;;  %v417_v3 = vsel %vm408_vm2, %v3755_v13, %v319_v56  ;;  %v3336_v53 = vld [vmem:[#allocation2 + $0xa0] sm:$0xff]   ;;  %v3339_v55 = vld [vmem:[#allocation2 + $0xe8] sm:$0xff]  }
  0xca   : > { %v3338_v56 = vld [vmem:[#allocation2 + $0x28] sm:$0xff]  }
  0xcb   : > { %v361_v47 = vpop.permute.xlu1 %360  ;;  %v349_v48 = vpop.permute.xlu0 %348 }
  0xcc   : > { %v369_v60 = vsel %vm368_vm7, %v361_v47, %v363_v43  ;;  %v357_v61 = vsel %vm356_vm9, %v349_v48, %v351_v38  ;;  %v3321_v38 = vld [vmem:[#allocation2 + $0x48] sm:$0xff]   ;;  %v3327_v43 = vld [vmem:[#allocation2 + $0xd0] sm:$0xff]   ;;  %v3331_v47 = vld [vmem:[#allocation2 + $0xd8] sm:$0xff]  }
  0xcd   : > { %v437_v4 = vsel %vm408_vm2, %v357_v61, %v369_v60  ;;  %v3330_v48 = vld [vmem:[#allocation2 + $0x18] sm:$0xff]   ;;  %v3343_v60 = vld [vmem:[#allocation2 + $0xf0] sm:$0xff]  }
  0xce   : > { %v3344_v61 = vld [vmem:[#allocation2 + $0xb0] sm:$0xff]  }
  0xcf   : > { %v377_v49 = vpop.permute.xlu1 %376  ;;  %v375_v50 = vpop.permute.xlu0 %374 }
  0xd0   : > { %v382_v54 = vsel %vm380_vm8, %v375_v50, %v377_v49 }
  0xd1   : > { %v447_v63 = vsel %vm418_vm6, %v440_v57, %v382_v54  ;;  %v3337_v54 = vld [vmem:[#allocation2 + $0x68] sm:$0xff]  }
  0xd2   : > { %v3340_v57 = vld [vmem:[#allocation2 + $0xa8] sm:$0xff]  }
  0xd3   : > { %v373_v51 = vpop.permute.xlu1 %372  ;;  %v329_v52 = vpop.permute.xlu0 %328 }
  0xd4   : > { %v381_v0 = vsel %vm380_vm8, %v373_v51, %v375_v50  ;;  %v333_v1 = vsel %vm330_vm4, %v327_v30, %v329_v52  ;;  %v3317_v30 = vld [vmem:[#allocation2 + $0x40] sm:$0xff]  }
  0xd5   : > { %v445_v9 = vsel %vm418_vm6, %v437_v4, %v381_v0  ;;  %v424_v10 = vsel %vm418_vm6, %v417_v3, %v333_v1  ;;  %v3333_v50 = vld [vmem:[#allocation2 + $0x60] sm:$0xff]   ;;  %v3347_v0 = vld [vmem:[#allocation2 + $0xf8] sm:$0xff]  }
  0xd6   : > { %v3335_v51 = vld [vmem:[#allocation2 + $0xe0] sm:$0xff]   ;;  %v3348_v1 = vld [vmem:[#allocation2 + $0xb8] sm:$0xff]  }
  0xd7   : > { %v389_v58 = vpop.permute.xlu1 %388  ;;  %v387_v59 = vpop.permute.xlu0 %386  ;;  %v3334_v52 = vld [vmem:[#allocation2 + $0x20] sm:$0xff]  }
  0xd8   : > { %v394_v62 = vsel %vm392_vm10, %v387_v59, %v389_v58  ;;  %v3351_v3 = vld [vmem:[#allocation2 + $0x1c0] sm:$0xff]  }
  0xd9   : > { %v454_v2 = vsel %vm425_vm5, %v447_v63, %v394_v62  ;;  %v3345_v62 = vld [vmem:[#allocation2 + $0x78] sm:$0xff]  }
  0xda   : > { %479 = vmatprep.subr.bf16.mxu0 %v454_v2  ;;  %v3346_v63 = vld [vmem:[#allocation2 + $0x38] sm:$0xff]   ;;  %v3349_v2 = vld [vmem:[#allocation2 + $0x140] sm:$0xff]  }
  0xdb   : > { %v385_v5 = vpop.permute.xlu1 %384  ;;  %v342_v6 = vpop.permute.xlu0 %341 }
  0xdc   : > { %v393_v7 = vsel %vm392_vm10, %v385_v5, %v387_v59  ;;  %v346_v8 = vsel %vm343_vm3, %v340_v29, %v342_v6  ;;  %v3342_v59 = vld [vmem:[#allocation2 + $0x30] sm:$0xff]  }
  0xdd   : > { %v451_v11 = vsel %vm425_vm5, %v445_v9, %v393_v7  ;;  %v433_v12 = vsel %vm425_vm5, %v424_v10, %v346_v8 }
  0xde   : > { %480 = vmatpush1.bf16.msra.mxu0 %v451_v11  ;;  %3240 = vmatpush3.bf16.msra.mxu1 %v433_v12 }
  0xdf   : > { %v367_v14 = vpop.permute.xlu1 %366  ;;  %v355_v13 = vpop.permute.xlu0 %354  ;;  %3241 = vmatprep.subr.bf16.mxu1 %v3615_v17 }
  0xe0   : > { %v371_v15 = vsel %vm368_vm7, %v365_v46, %v367_v14  ;;  %v359_v16 = vsel %vm356_vm9, %v353_v44, %v355_v13  ;;  %v3326_v44 = vld [vmem:[#allocation2 + $0x10] sm:$0xff]   ;;  %v3329_v46 = vld [vmem:[#allocation2 + $0x58] sm:$0xff]  }
  0xe1   : > { %v443_v20 = vsel %vm408_vm2, %v359_v16, %v371_v15 }
  0xe3   : > { %v391_v18 = vpop.permute.xlu1 %390  ;;  %v379_v19 = vpop.permute.xlu0 %378 }
  0xe4   : > { %v395_v21 = vsel %vm392_vm10, %v389_v58, %v391_v18  ;;  %v383_v22 = vsel %vm380_vm8, %v377_v49, %v379_v19  ;;  %v3332_v49 = vld [vmem:[#allocation2 + $0x98] sm:$0xff]   ;;  %v3341_v58 = vld [vmem:[#allocation2 + $0x70] sm:$0xff]  }
  0xe5   : > { %v449_v23 = vsel %vm418_vm6, %v443_v20, %v383_v22 }
  0xe6   : > { %v457_v24 = vsel %vm425_vm5, %v449_v23, %v395_v21  ;;  %v3350_v23 = vld [vmem:[#allocation2 + $0x100] sm:$0xff]  }
  0xe7   : > { %v399_v25 = vpop.permute.xlu1 %398  ;;  %3242 = vmatpush3.bf16.msra.mxu1 %v457_v24  ;;  %v397_v26 = vpop.permute.xlu0 %396 }
  0xe8   : > { %3243 = vmatprep.subr.bf16.mxu1 %v3615_v17  ;;  %v405_v27 = vsel %vm404_vm11, %v397_v26, %v399_v25  ;;  %v3318_v17 = vld [vmem:[#allocation2] sm:$0xff]  }
  0xe9   : > { %v469_v34 = vsel %vm408_vm2, %v405_v27, 0 }
  0xeb   : > { %v403_v28 = vpop.permute.xlu1 %402  ;;  %v401_v29 = vpop.permute.xlu0 %400 }
  0xec   : > { %v406_v32 = vsel %vm404_vm11, %v399_v25, %v401_v29  ;;  %v407_v33 = vsel %vm404_vm11, %v401_v29, %v403_v28  ;;  %v3352_v28 = vld [vmem:[#allocation2 + $0x180] sm:$0xff]  }
  0xed   : > { %2772 = vmatprep.subr.msk.bf16.mxu0 %vm408_vm2, %v406_v32  ;;  %v475_v35 = vsel %vm408_vm2, %v407_v33, 0  ;;  %v3355_v32 = vld [vmem:[#allocation2 + $0x1c8] sm:$0xff]  }
  0xee   : > { %482 = vmatpush1.bf16.msra.mxu0 %v469_v34  ;;  %3244 = vmatpush3.bf16.msra.mxu1 %v475_v35  ;;  %v3354_v33 = vld [vmem:[#allocation2 + $0x108] sm:$0xff]   ;;  %v3357_v35 = vld [vmem:[#allocation2 + $0x150] sm:$0xff]  }
  0xef   : > { %2975 = vmatprep.subr.bf16.mxu0 %v3317_v30  ;;  %2997 = vmatprep.subr.bf16.mxu1 %v3319_v31  ;;  %v3353_v31 = vld [vmem:[#allocation2 + $0x148] sm:$0xff]  }
  0xf0   : > { %v3356_v34 = vld [vmem:[#allocation2 + $0x188] sm:$0xff]  }
  0xf1   : > { %2773 = vmatmul.mubr.msk.bf16.vlgmr.msra.gmra.mrb[0].mxu0 %vm464_vm12, %v278_v36  ;;  %3246 = vmatmul.mubr.msk.bf16.vlgmr.msra.gmra.mrb[0].mxu1 %vm464_vm12, %v278_v36  ;;  %v3359_v36 = vld [vmem:[#allocation2 + $0x1d0] sm:$0xff]  }
  0xf2   : > { %2976 = vmatpush3.bf16.msra.mxu0 %v3318_v17  ;;  %2998 = vmatpush3.bf16.msra.mxu1 %v3320_v37  ;;  %v3358_v17 = vld [vmem:[#allocation2 + $0x110] sm:$0xff]  }
  0xf3   : > { %2977 = vmatprep.subr.bf16.mxu0 %v3321_v38  ;;  %2999 = vmatprep.subr.bf16.mxu1 %v3323_v39  ;;  %v3360_v37 = vld [vmem:[#allocation2 + $0x190] sm:$0xff]   ;;  %v3361_v38 = vld [vmem:[#allocation2 + $0x158] sm:$0xff]  }
  0xf4   : > { %v3363_v39 = vld [vmem:[#allocation2 + $0x1d8] sm:$0xff]  }
  0xf6   : > { %2978 = vmatpush3.bf16.msra.mxu0 %v3322_v40  ;;  %3000 = vmatpush3.bf16.msra.mxu1 %v3324_v41  ;;  %v3362_v40 = vld [vmem:[#allocation2 + $0x118] sm:$0xff]  }
  0xf7   : > { %2979 = vmatprep.subr.bf16.mxu0 %v3325_v42  ;;  %3001 = vmatprep.subr.bf16.mxu1 %v3327_v43  ;;  %v3364_v41 = vld [vmem:[#allocation2 + $0x198] sm:$0xff]   ;;  %v3365_v42 = vld [vmem:[#allocation2 + $0x160] sm:$0xff]  }
  0xf8   : > { %v3367_v43 = vld [vmem:[#allocation2 + $0x1e0] sm:$0xff]  }
  0xfa   : > { %2980 = vmatpush3.bf16.msra.mxu0 %v3326_v44  ;;  %3002 = vmatpush3.bf16.msra.mxu1 %v3328_v45  ;;  %v3366_v44 = vld [vmem:[#allocation2 + $0x120] sm:$0xff]  }
  0xfb   : > { %2981 = vmatprep.subr.bf16.mxu0 %v3329_v46  ;;  %3003 = vmatprep.subr.bf16.mxu1 %v3331_v47  ;;  %v3368_v45 = vld [vmem:[#allocation2 + $0x1a0] sm:$0xff]   ;;  %v3369_v46 = vld [vmem:[#allocation2 + $0x168] sm:$0xff]  }
  0xfc   : > { %v462_v4 = vpop.permute.xlu0 %461  ;;  %v3371_v47 = vld [vmem:[#allocation2 + $0x1e8] sm:$0xff]  }
  0xfe   : > { %2982 = vmatpush3.bf16.msra.mxu0 %v3330_v48  ;;  %3004 = vmatpush3.bf16.msra.mxu1 %v3332_v49  ;;  %v3370_v48 = vld [vmem:[#allocation2 + $0x128] sm:$0xff]  }
  0xff   : > { %2983 = vmatprep.subr.bf16.mxu0 %v3333_v50  ;;  %3005 = vmatprep.subr.bf16.mxu1 %v3335_v51  ;;  %v3372_v49 = vld [vmem:[#allocation2 + $0x1a8] sm:$0xff]   ;;  %v3373_v50 = vld [vmem:[#allocation2 + $0x170] sm:$0xff]  }
 0x100   : > { %v3375_v51 = vld [vmem:[#allocation2 + $0x1f0] sm:$0xff]  }
 0x102   : > { %2984 = vmatpush3.bf16.msra.mxu0 %v3334_v52  ;;  %3006 = vmatpush3.bf16.msra.mxu1 %v3336_v53  ;;  %v3374_v52 = vld [vmem:[#allocation2 + $0x130] sm:$0xff]  }
 0x103   : > { %2985 = vmatprep.subr.bf16.mxu0 %v3337_v54  ;;  %3007 = vmatprep.subr.bf16.mxu1 %v3339_v55  ;;  %v3376_v53 = vld [vmem:[#allocation2 + $0x1b0] sm:$0xff]   ;;  %v3377_v54 = vld [vmem:[#allocation2 + $0x178] sm:$0xff]  }
 0x104   : > { %v3379_v55 = vld [vmem:[#allocation2 + $0x1f8] sm:$0xff]  }
 0x106   : > { %2986 = vmatpush3.bf16.msra.mxu0 %v3338_v56  ;;  %3008 = vmatpush3.bf16.msra.mxu1 %v3340_v57  ;;  %v3378_v56 = vld [vmem:[#allocation2 + $0x138] sm:$0xff]  }
 0x107   : > { %2987 = vmatprep.subr.bf16.mxu0 %v3341_v58  ;;  %3009 = vmatprep.subr.bf16.mxu1 %v3343_v60  ;;  %v3380_v57 = vld [vmem:[#allocation2 + $0x1b8] sm:$0xff]  }
 0x10a   : > { %2988 = vmatpush3.bf16.msra.mxu0 %v3342_v59  ;;  %3010 = vmatpush3.bf16.msra.mxu1 %v3344_v61  ;;  %v3381_v59 = vld [vmem:[#allocation2 + $0x240] sm:$0xff]  }
 0x10b   : > { %2989 = vmatprep.subr.bf16.mxu0 %v3345_v62  ;;  %3011 = vmatprep.subr.bf16.mxu1 %v3347_v0  ;;  %v3383_v61 = vld [vmem:[#allocation2 + $0x2c0] sm:$0xff]  }
 0x10e   : > { %2990 = vmatpush3.bf16.msra.mxu0 %v3346_v63  ;;  %3012 = vmatpush3.bf16.msra.mxu1 %v3348_v1  ;;  %v3382_v63 = vld [vmem:[#allocation2 + $0x200] sm:$0xff]  }
 0x10f   : > { %3019 = vmatprep.subr.bf16.mxu0 %v3349_v2  ;;  %3041 = vmatprep.subr.bf16.mxu1 %v3351_v3  ;;  %v3384_v2 = vld [vmem:[#allocation2 + $0x280] sm:$0xff]  }
 0x1c4   : > { %v511_v5 = vpop.f32.mrb[0].mxu0  ;;  %v552_v6 = vpop.f32.mrb[0].mxu1 }
 0x1c5   : > { %v512_v7 = vadd.f32 %v511_v5, %v462_v4  ;;  %v513_v8 = vpop.f32.mrb[1].mxu0  ;;  %v553_v9 = vadd.f32 %v552_v6, %v462_v4  ;;  %v3247_v10 = vpop.f32.mrb[1].mxu1  ;;  %v3387_v6 = vld [vmem:[#allocation2 + $0x2c8] sm:$0xff]  }
 0x1c6   : > { %v514_v11 = vadd.f32 %v513_v8, %v462_v4  ;;  %v515_v12 = vpop.f32.mrb[2].mxu0  ;;  %v555_v14 = vpop.f32.mrb[2].mxu1  ;;  %v3385_v4 = vld [vmem:[#allocation2 + $0x248] sm:$0xff]   ;;  %v3389_v10 = vld [vmem:[#allocation2 + $0x250] sm:$0xff]  }
 0x1c7   : > { %v3837_v13 = vmax.f32 %v512_v7, 0.0  ;;  %v3839_v15 = vmax.f32 %v553_v9, 0.0  ;;  %v516_v16 = vpop.f32.mrb[3].mxu0  ;;  %v3248_v18 = vpop.f32.mrb[3].mxu1  ;;  %v3386_v8 = vld [vmem:[#allocation2 + $0x208] sm:$0xff]   ;;  %v3390_v12 = vld [vmem:[#allocation2 + $0x210] sm:$0xff]  }
 0x1c8   : > { %v3841_v19 = vmax.f32 %v514_v11, 0.0  ;;  %v3388_v9 = vld [vmem:[#allocation2 + $0x288] sm:$0xff]   ;;  %v3391_v11 = vld [vmem:[#allocation2 + $0x2d0] sm:$0xff]   ;;  %v3393_v16 = vld [vmem:[#allocation2 + $0x258] sm:$0xff]  }
 0x1c9   : > { %561 = vst [vmem:[%s276_s16] sm:$0xff] %v3837_v13  ;;  %563 = vst [vmem:[%s276_s16 + $0x10] sm:$0xff] %v3839_v15  ;;  %v567_v20 = vrot.slane %v3837_v13, 1  ;;  %v569_v21 = vrot.slane %v3839_v15, 1  ;;  %v609_v25 = vpack.c.bf16 %v3837_v13, %v3837_v13  ;;  %v611_v29 = vpack.c.bf16 %v3839_v15, %v3839_v15  ;;  %v3392_v14 = vld [vmem:[#allocation2 + $0x290] sm:$0xff]   ;;  %v3395_v18 = vld [vmem:[#allocation2 + $0x2d8] sm:$0xff]  }
 0x1ca   : > { %562 = vst [vmem:[%s276_s16 + $0x8] sm:$0xff] %v3841_v19  ;;  %v610_v22 = vpack.c.bf16 %v3841_v19, %v3841_v19  ;;  %v574_v24 = vrot.slane %v3841_v19, 2  ;;  %v568_v58 = vrot.slane %v3841_v19, 1  ;;  %v573_v60 = vrot.slane %v3837_v13, 2 }
 0x1cb   : > { %v612_v26 = vpack.c.bf16 %v567_v20, %v567_v20  ;;  %v614_v27 = vpack.c.bf16 %v569_v21, %v569_v21  ;;  %v579_v62 = vrot.slane %v3837_v13, 3  ;;  %v581_v0 = vrot.slane %v3839_v15, 3  ;;  %v3394_v20 = vld [vmem:[#allocation2 + $0x218] sm:$0xff]  }
 0x1cc   : > { %2201 = vmatprep.mubr.bf16.mxu0 %v610_v22  ;;  %v616_v30 = vpack.c.bf16 %v574_v24, %v574_v24  ;;  %v613_v1 = vpack.c.bf16 %v568_v58, %v568_v58  ;;  %v615_v3 = vpack.c.bf16 %v573_v60, %v573_v60  ;;  %v3396_v21 = vld [vmem:[#allocation2 + $0x298] sm:$0xff]   ;;  %v3397_v22 = vld [vmem:[#allocation2 + $0x260] sm:$0xff]  }
 0x1cd   : > { %2202 = vmatmul.mubr.bf16.vlgmr.msra.gmra.mrb[4].mxu0 %v609_v25  ;;  %2241 = vmatprep.mubr.bf16.mxu1 %v612_v26  ;;  %v618_v5 = vpack.c.bf16 %v579_v62, %v579_v62  ;;  %v620_v7 = vpack.c.bf16 %v581_v0, %v581_v0  ;;  %v3398_v24 = vld [vmem:[#allocation2 + $0x220] sm:$0xff]   ;;  %v3401_v26 = vld [vmem:[#allocation2 + $0x268] sm:$0xff]   ;;  %v3427_v58 = vld [vmem:[#allocation2 + $0x3d8] sm:$0xff]  }
 0x1ce   : > { %3020 = vmatpush3.bf16.msra.mxu0 %v3350_v23  ;;  %2242 = vmatmul.mubr.bf16.vlgmr.msra.gmra.mrb[4].mxu1 %v611_v29  ;;  %v3399_v23 = vld [vmem:[#allocation2 + $0x2e0] sm:$0xff]   ;;  %v3404_v29 = vld [vmem:[#allocation2 + $0x2a8] sm:$0xff]   ;;  %v3428_v60 = vld [vmem:[#allocation2 + $0x398] sm:$0xff]  }
 0x1cf   : > { %2281 = vmatprep.mubr.bf16.mxu0 %v614_v27  ;;  %3042 = vmatpush3.bf16.msra.mxu1 %v3352_v28  ;;  %v3400_v25 = vld [vmem:[#allocation2 + $0x2a0] sm:$0xff]   ;;  %v3403_v27 = vld [vmem:[#allocation2 + $0x2e8] sm:$0xff]  }
 0x1d0   : > { %2321 = vmatprep.mubr.bf16.mxu1 %v616_v30  ;;  %3021 = vmatprep.subr.bf16.mxu0 %v3353_v31  ;;  %v3402_v28 = vld [vmem:[#allocation2 + $0x228] sm:$0xff]   ;;  %v3405_v30 = vld [vmem:[#allocation2 + $0x270] sm:$0xff]   ;;  %v3431_v62 = vld [vmem:[#allocation2 + $0x3e0] sm:$0xff]  }
 0x1d1   : > { %3043 = vmatprep.subr.bf16.mxu1 %v3355_v32  ;;  %v3407_v31 = vld [vmem:[#allocation2 + $0x2f0] sm:$0xff]   ;;  %v3432_v0 = vld [vmem:[#allocation2 + $0x3a0] sm:$0xff]  }
 0x1d2   : > { %3022 = vmatpush3.bf16.msra.mxu0 %v3354_v33  ;;  %v3406_v32 = vld [vmem:[#allocation2 + $0x230] sm:$0xff]  }
 0x1d3   : > { %3044 = vmatpush3.bf16.msra.mxu1 %v3356_v34  ;;  %3023 = vmatprep.subr.bf16.mxu0 %v3357_v35  ;;  %v3408_v33 = vld [vmem:[#allocation2 + $0x2b0] sm:$0xff]   ;;  %v3409_v34 = vld [vmem:[#allocation2 + $0x278] sm:$0xff]  }
 0x1d4   : > { %3045 = vmatprep.subr.bf16.mxu1 %v3359_v36  ;;  %v3411_v35 = vld [vmem:[#allocation2 + $0x2f8] sm:$0xff]  }
 0x1d5   : > { %v3410_v36 = vld [vmem:[#allocation2 + $0x238] sm:$0xff]  }
 0x1d6   : > { %3024 = vmatpush3.bf16.msra.mxu0 %v3358_v17  ;;  %v3412_v17 = vld [vmem:[#allocation2 + $0x2b8] sm:$0xff]  }
 0x1d7   : > { %3046 = vmatpush3.bf16.msra.mxu1 %v3360_v37  ;;  %3025 = vmatprep.subr.bf16.mxu0 %v3361_v38  ;;  %v575_v37 = vrot.slane %v3839_v15, 2  ;;  %v3413_v38 = vld [vmem:[#allocation2 + $0x340] sm:$0xff]  }
 0x1d8   : > { %3047 = vmatprep.subr.bf16.mxu1 %v3363_v39  ;;  %v580_v39 = vrot.slane %v3841_v19, 3 }
 0x1da   : > { %3026 = vmatpush3.bf16.msra.mxu0 %v3362_v40  ;;  %v3415_v40 = vld [vmem:[#allocation2 + $0x3c0] sm:$0xff]  }
 0x1db   : > { %3048 = vmatpush3.bf16.msra.mxu1 %v3364_v41  ;;  %3027 = vmatprep.subr.bf16.mxu0 %v3365_v42  ;;  %v586_v41 = vrot.slane %v3841_v19, 4  ;;  %v3414_v42 = vld [vmem:[#allocation2 + $0x300] sm:$0xff]  }
 0x1dc   : > { %3049 = vmatprep.subr.bf16.mxu1 %v3367_v43  ;;  %v591_v43 = vrot.slane %v3837_v13, 5 }
 0x1de   : > { %3028 = vmatpush3.bf16.msra.mxu0 %v3366_v44  ;;  %v617_v44 = vpack.c.bf16 %v575_v37, %v575_v37  ;;  %v3459_v37 = vld [vmem:[#allocation2 + $0x4d8] sm:$0xff]  }
 0x1df   : > { %3050 = vmatpush3.bf16.msra.mxu1 %v3368_v45  ;;  %3029 = vmatprep.subr.bf16.mxu0 %v3369_v46  ;;  %v3416_v45 = vld [vmem:[#allocation2 + $0x380] sm:$0xff]   ;;  %v619_v46 = vpack.c.bf16 %v580_v39, %v580_v39  ;;  %v3460_v39 = vld [vmem:[#allocation2 + $0x498] sm:$0xff]  }
 0x1e0   : > { %3051 = vmatprep.subr.bf16.mxu1 %v3371_v47  ;;  %v3417_v47 = vld [vmem:[#allocation2 + $0x348] sm:$0xff]  }
 0x1e2   : > { %3030 = vmatpush3.bf16.msra.mxu0 %v3370_v48  ;;  %v622_v48 = vpack.c.bf16 %v586_v41, %v586_v41  ;;  %v3463_v41 = vld [vmem:[#allocation2 + $0x4e0] sm:$0xff]  }
 0x1e3   : > { %3052 = vmatpush3.bf16.msra.mxu1 %v3372_v49  ;;  %3031 = vmatprep.subr.bf16.mxu0 %v3373_v50  ;;  %v3419_v49 = vld [vmem:[#allocation2 + $0x3c8] sm:$0xff]   ;;  %v624_v50 = vpack.c.bf16 %v591_v43, %v591_v43  ;;  %v3464_v43 = vld [vmem:[#allocation2 + $0x4a0] sm:$0xff]  }
 0x1e4   : > { %3053 = vmatprep.subr.bf16.mxu1 %v3375_v51  ;;  %v3418_v51 = vld [vmem:[#allocation2 + $0x308] sm:$0xff]  }
 0x1e6   : > { %3032 = vmatpush3.bf16.msra.mxu0 %v3374_v52  ;;  %v3420_v52 = vld [vmem:[#allocation2 + $0x388] sm:$0xff]  }
 0x1e7   : > { %3054 = vmatpush3.bf16.msra.mxu1 %v3376_v53  ;;  %3033 = vmatprep.subr.bf16.mxu0 %v3377_v54  ;;  %v3421_v53 = vld [vmem:[#allocation2 + $0x350] sm:$0xff]  }
 0x1e8   : > { %3055 = vmatprep.subr.bf16.mxu1 %v3379_v55  ;;  %v3423_v54 = vld [vmem:[#allocation2 + $0x3d0] sm:$0xff]  }
 0x1e9   : > { %v3422_v55 = vld [vmem:[#allocation2 + $0x310] sm:$0xff]  }
 0x1ea   : > { %3034 = vmatpush3.bf16.msra.mxu0 %v3378_v56  ;;  %v3424_v56 = vld [vmem:[#allocation2 + $0x390] sm:$0xff]  }
 0x1eb   : > { %3056 = vmatpush3.bf16.msra.mxu1 %v3380_v57  ;;  %3063 = vmatprep.subr.bf16.mxu0 %v3381_v59  ;;  %v3425_v57 = vld [vmem:[#allocation2 + $0x358] sm:$0xff]  }
 0x1ec   : > { %3085 = vmatprep.subr.bf16.mxu1 %v3383_v61  ;;  %v3426_v59 = vld [vmem:[#allocation2 + $0x318] sm:$0xff]   ;;  %v3429_v61 = vld [vmem:[#allocation2 + $0x360] sm:$0xff]  }
 0x1ed   : > { %2282 = vmatmul.mubr.bf16.vlgmr.msra.gmra.mrb[8].mxu0 %v613_v1  ;;  %v3433_v1 = vld [vmem:[#allocation2 + $0x368] sm:$0xff]  }
 0x1ee   : > { %2322 = vmatmul.mubr.bf16.vlgmr.msra.gmra.mrb[8].mxu1 %v615_v3  ;;  %3064 = vmatpush3.bf16.msra.mxu0 %v3382_v63  ;;  %v3430_v63 = vld [vmem:[#allocation2 + $0x320] sm:$0xff]   ;;  %v3434_v3 = vld [vmem:[#allocation2 + $0x328] sm:$0xff]  }
 0x1ef   : > { %2361 = vmatprep.mubr.bf16.mxu0 %v618_v5  ;;  %3086 = vmatpush3.bf16.msra.mxu1 %v3384_v2  ;;  %v3435_v2 = vld [vmem:[#allocation2 + $0x3e8] sm:$0xff]   ;;  %v3437_v5 = vld [vmem:[#allocation2 + $0x370] sm:$0xff]  }
 0x1f0   : > { %2401 = vmatprep.mubr.bf16.mxu1 %v620_v7  ;;  %3065 = vmatprep.subr.bf16.mxu0 %v3385_v4  ;;  %v3436_v4 = vld [vmem:[#allocation2 + $0x3a8] sm:$0xff]   ;;  %v3438_v7 = vld [vmem:[#allocation2 + $0x330] sm:$0xff]  }
 0x1f1   : > { %3087 = vmatprep.subr.bf16.mxu1 %v3387_v6  ;;  %v3439_v6 = vld [vmem:[#allocation2 + $0x3f0] sm:$0xff]  }
 0x1f2   : > { %3066 = vmatpush3.bf16.msra.mxu0 %v3386_v8  ;;  %v3440_v8 = vld [vmem:[#allocation2 + $0x3b0] sm:$0xff]  }
 0x1f3   : > { %3088 = vmatpush3.bf16.msra.mxu1 %v3388_v9  ;;  %3067 = vmatprep.subr.bf16.mxu0 %v3389_v10  ;;  %v3441_v9 = vld [vmem:[#allocation2 + $0x378] sm:$0xff]  }
 0x1f4   : > { %3089 = vmatprep.subr.bf16.mxu1 %v3391_v11  ;;  %v3443_v10 = vld [vmem:[#allocation2 + $0x3f8] sm:$0xff]  }
 0x1f5   : > { %v3442_v11 = vld [vmem:[#allocation2 + $0x338] sm:$0xff]  }
 0x1f6   : > { %3068 = vmatpush3.bf16.msra.mxu0 %v3390_v12  ;;  %v3444_v12 = vld [vmem:[#allocation2 + $0x3b8] sm:$0xff]  }
 0x1f7   : > { %3090 = vmatpush3.bf16.msra.mxu1 %v3392_v14  ;;  %3069 = vmatprep.subr.bf16.mxu0 %v3393_v16  ;;  %v585_v14 = vrot.slane %v3837_v13, 4  ;;  %v3445_v16 = vld [vmem:[#allocation2 + $0x440] sm:$0xff]  }
 0x1f8   : > { %3091 = vmatprep.subr.bf16.mxu1 %v3395_v18  ;;  %v587_v18 = vrot.slane %v3839_v15, 4 }
 0x1fa   : > { %3070 = vmatpush3.bf16.msra.mxu0 %v3394_v20  ;;  %v3447_v20 = vld [vmem:[#allocation2 + $0x4c0] sm:$0xff]  }
 0x1fb   : > { %3092 = vmatpush3.bf16.msra.mxu1 %v3396_v21  ;;  %3071 = vmatprep.subr.bf16.mxu0 %v3397_v22  ;;  %v593_v21 = vrot.slane %v3839_v15, 5  ;;  %v3446_v22 = vld [vmem:[#allocation2 + $0x400] sm:$0xff]  }
 0x1fc   : > { %3093 = vmatprep.subr.bf16.mxu1 %v3399_v23  ;;  %v598_v23 = vrot.slane %v3841_v19, 6 }
 0x1fe   : > { %3072 = vmatpush3.bf16.msra.mxu0 %v3398_v24  ;;  %v621_v24 = vpack.c.bf16 %v585_v14, %v585_v14  ;;  %v3490_v14 = vld [vmem:[#allocation2 + $0x518] sm:$0xff]  }
 0x1ff   : > { %3094 = vmatpush3.bf16.msra.mxu1 %v3400_v25  ;;  %3073 = vmatprep.subr.bf16.mxu0 %v3401_v26  ;;  %v3448_v25 = vld [vmem:[#allocation2 + $0x480] sm:$0xff]   ;;  %v623_v26 = vpack.c.bf16 %v587_v18, %v587_v18 }
 0x200   : > { %3095 = vmatprep.subr.bf16.mxu1 %v3403_v27  ;;  %v3449_v27 = vld [vmem:[#allocation2 + $0x448] sm:$0xff]   ;;  %v3493_v18 = vld [vmem:[#allocation2 + $0x560] sm:$0xff]  }
 0x202   : > { %3074 = vmatpush3.bf16.msra.mxu0 %v3402_v28  ;;  %v626_v28 = vpack.c.bf16 %v593_v21, %v593_v21  ;;  %v3494_v21 = vld [vmem:[#allocation2 + $0x520] sm:$0xff]  }
 0x203   : > { %3096 = vmatpush3.bf16.msra.mxu1 %v3404_v29  ;;  %3075 = vmatprep.subr.bf16.mxu0 %v3405_v30  ;;  %v3451_v29 = vld [vmem:[#allocation2 + $0x4c8] sm:$0xff]   ;;  %v628_v30 = vpack.c.bf16 %v598_v23, %v598_v23 }
 0x204   : > { %3097 = vmatprep.subr.bf16.mxu1 %v3407_v31  ;;  %v3450_v31 = vld [vmem:[#allocation2 + $0x408] sm:$0xff]  }
 0x205   : > { %v3497_v23 = vld [vmem:[#allocation2 + $0x568] sm:$0xff]  }
 0x206   : > { %3076 = vmatpush3.bf16.msra.mxu0 %v3406_v32  ;;  %v3452_v32 = vld [vmem:[#allocation2 + $0x488] sm:$0xff]  }
 0x207   : > { %3098 = vmatpush3.bf16.msra.mxu1 %v3408_v33  ;;  %3077 = vmatprep.subr.bf16.mxu0 %v3409_v34  ;;  %v3453_v33 = vld [vmem:[#allocation2 + $0x450] sm:$0xff]  }
 0x208   : > { %3099 = vmatprep.subr.bf16.mxu1 %v3411_v35  ;;  %v3455_v34 = vld [vmem:[#allocation2 + $0x4d0] sm:$0xff]  }
 0x209   : > { %v3454_v35 = vld [vmem:[#allocation2 + $0x410] sm:$0xff]  }
 0x20a   : > { %3078 = vmatpush3.bf16.msra.mxu0 %v3410_v36  ;;  %v3456_v36 = vld [vmem:[#allocation2 + $0x490] sm:$0xff]  }
 0x20b   : > { %3100 = vmatpush3.bf16.msra.mxu1 %v3412_v17  ;;  %3107 = vmatprep.subr.bf16.mxu0 %v3413_v38  ;;  %v3457_v17 = vld [vmem:[#allocation2 + $0x458] sm:$0xff]  }
 0x20c   : > { %3129 = vmatprep.subr.bf16.mxu1 %v3415_v40  ;;  %v3458_v38 = vld [vmem:[#allocation2 + $0x418] sm:$0xff]   ;;  %v3461_v40 = vld [vmem:[#allocation2 + $0x460] sm:$0xff]  }
 0x20d   : > { %2362 = vmatmul.mubr.bf16.vlgmr.msra.gmra.mrb[12].mxu0 %v617_v44  ;;  %v3465_v44 = vld [vmem:[#allocation2 + $0x468] sm:$0xff]  }
 0x20e   : > { %2402 = vmatmul.mubr.bf16.vlgmr.msra.gmra.mrb[12].mxu1 %v619_v46  ;;  %3108 = vmatpush3.bf16.msra.mxu0 %v3414_v42  ;;  %v3462_v42 = vld [vmem:[#allocation2 + $0x420] sm:$0xff]   ;;  %v3466_v46 = vld [vmem:[#allocation2 + $0x428] sm:$0xff]  }
 0x20f   : > { %2441 = vmatprep.mubr.bf16.mxu0 %v622_v48  ;;  %3130 = vmatpush3.bf16.msra.mxu1 %v3416_v45  ;;  %v3467_v45 = vld [vmem:[#allocation2 + $0x4e8] sm:$0xff]   ;;  %v3469_v48 = vld [vmem:[#allocation2 + $0x470] sm:$0xff]  }
 0x210   : > { %2481 = vmatprep.mubr.bf16.mxu1 %v624_v50  ;;  %3109 = vmatprep.subr.bf16.mxu0 %v3417_v47  ;;  %v3468_v47 = vld [vmem:[#allocation2 + $0x4a8] sm:$0xff]   ;;  %v3470_v50 = vld [vmem:[#allocation2 + $0x430] sm:$0xff]  }
 0x211   : > { %3131 = vmatprep.subr.bf16.mxu1 %v3419_v49  ;;  %v3471_v49 = vld [vmem:[#allocation2 + $0x4f0] sm:$0xff]  }
 0x212   : > { %3110 = vmatpush3.bf16.msra.mxu0 %v3418_v51  ;;  %v3472_v51 = vld [vmem:[#allocation2 + $0x4b0] sm:$0xff]  }
 0x213   : > { %3132 = vmatpush3.bf16.msra.mxu1 %v3420_v52  ;;  %3111 = vmatprep.subr.bf16.mxu0 %v3421_v53  ;;  %v3473_v52 = vld [vmem:[#allocation2 + $0x478] sm:$0xff]  }
 0x214   : > { %3133 = vmatprep.subr.bf16.mxu1 %v3423_v54  ;;  %v3475_v53 = vld [vmem:[#allocation2 + $0x4f8] sm:$0xff]  }
 0x215   : > { %v3474_v54 = vld [vmem:[#allocation2 + $0x438] sm:$0xff]  }
 0x216   : > { %3112 = vmatpush3.bf16.msra.mxu0 %v3422_v55  ;;  %v3476_v55 = vld [vmem:[#allocation2 + $0x4b8] sm:$0xff]  }
 0x217   : > { %3134 = vmatpush3.bf16.msra.mxu1 %v3424_v56  ;;  %3113 = vmatprep.subr.bf16.mxu0 %v3425_v57  ;;  %v592_v56 = vrot.slane %v3841_v19, 5  ;;  %v3477_v57 = vld [vmem:[#allocation2 + $0x540] sm:$0xff]  }
 0x218   : > { %3135 = vmatprep.subr.bf16.mxu1 %v3427_v58  ;;  %v597_v58 = vrot.slane %v3837_v13, 6 }
 0x21a   : > { %3114 = vmatpush3.bf16.msra.mxu0 %v3426_v59  ;;  %v3479_v59 = vld [vmem:[#allocation2 + $0x5c0] sm:$0xff]  }
 0x21b   : > { %3136 = vmatpush3.bf16.msra.mxu1 %v3428_v60  ;;  %3115 = vmatprep.subr.bf16.mxu0 %v3429_v61  ;;  %v603_v60 = vrot.slane %v3837_v13, 7  ;;  %v3478_v61 = vld [vmem:[#allocation2 + $0x500] sm:$0xff]   ;;  %v3484_v13 = vld [vmem:[#allocation2 + $0x588] sm:$0xff]  }
 0x21c   : > { %3137 = vmatprep.subr.bf16.mxu1 %v3431_v62  ;;  %v605_v62 = vrot.slane %v3839_v15, 7 }
 0x21e   : > { %3116 = vmatpush3.bf16.msra.mxu0 %v3430_v63  ;;  %v625_v63 = vpack.c.bf16 %v592_v56, %v592_v56 }
 0x21f   : > { %3138 = vmatpush3.bf16.msra.mxu1 %v3432_v0  ;;  %3117 = vmatprep.subr.bf16.mxu0 %v3433_v1  ;;  %v3480_v0 = vld [vmem:[#allocation2 + $0x580] sm:$0xff]   ;;  %v627_v1 = vpack.c.bf16 %v597_v58, %v597_v58 }
 0x220   : > { %3139 = vmatprep.subr.bf16.mxu1 %v3435_v2  ;;  %v3481_v2 = vld [vmem:[#allocation2 + $0x548] sm:$0xff]  }
 0x222   : > { %3118 = vmatpush3.bf16.msra.mxu0 %v3434_v3  ;;  %v630_v3 = vpack.c.bf16 %v603_v60, %v603_v60 }
 0x223   : > { %3140 = vmatpush3.bf16.msra.mxu1 %v3436_v4  ;;  %3119 = vmatprep.subr.bf16.mxu0 %v3437_v5  ;;  %v3483_v4 = vld [vmem:[#allocation2 + $0x5c8] sm:$0xff]   ;;  %v632_v5 = vpack.c.bf16 %v605_v62, %v605_v62 }
 0x224   : > { %3141 = vmatprep.subr.bf16.mxu1 %v3439_v6  ;;  %v3482_v6 = vld [vmem:[#allocation2 + $0x508] sm:$0xff]  }
 0x226   : > { %3120 = vmatpush3.bf16.msra.mxu0 %v3438_v7  ;;  %v3485_v7 = vld [vmem:[#allocation2 + $0x550] sm:$0xff]  }
 0x227   : > { %3142 = vmatpush3.bf16.msra.mxu1 %v3440_v8  ;;  %3121 = vmatprep.subr.bf16.mxu0 %v3441_v9  ;;  %v3487_v8 = vld [vmem:[#allocation2 + $0x5d0] sm:$0xff]  }
 0x228   : > { %3143 = vmatprep.subr.bf16.mxu1 %v3443_v10  ;;  %v3486_v9 = vld [vmem:[#allocation2 + $0x510] sm:$0xff]  }
 0x229   : > { %v3488_v10 = vld [vmem:[#allocation2 + $0x590] sm:$0xff]  }
 0x22a   : > { %3122 = vmatpush3.bf16.msra.mxu0 %v3442_v11  ;;  %v3489_v11 = vld [vmem:[#allocation2 + $0x558] sm:$0xff]  }
 0x22b   : > { %3144 = vmatpush3.bf16.msra.mxu1 %v3444_v12  ;;  %3151 = vmatprep.subr.bf16.mxu0 %v3445_v16  ;;  %v3491_v12 = vld [vmem:[#allocation2 + $0x5d8] sm:$0xff]  }
 0x22c   : > { %3173 = vmatprep.subr.bf16.mxu1 %v3447_v20  ;;  %v3492_v16 = vld [vmem:[#allocation2 + $0x598] sm:$0xff]   ;;  %v3495_v20 = vld [vmem:[#allocation2 + $0x5e0] sm:$0xff]  }
 0x22d   : > { %2442 = vmatmul.mubr.bf16.vlgmr.msra.gmra.mrb[16].mxu0 %v621_v24  ;;  %v3499_v24 = vld [vmem:[#allocation2 + $0x5e8] sm:$0xff]  }
 0x22e   : > { %2482 = vmatmul.mubr.bf16.vlgmr.msra.gmra.mrb[16].mxu1 %v623_v26  ;;  %3152 = vmatpush3.bf16.msra.mxu0 %v3446_v22  ;;  %v3496_v22 = vld [vmem:[#allocation2 + $0x5a0] sm:$0xff]   ;;  %v3500_v26 = vld [vmem:[#allocation2 + $0x5a8] sm:$0xff]  }
 0x22f   : > { %2521 = vmatprep.mubr.bf16.mxu0 %v626_v28  ;;  %3174 = vmatpush3.bf16.msra.mxu1 %v3448_v25  ;;  %v3498_v25 = vld [vmem:[#allocation2 + $0x528] sm:$0xff]   ;;  %v3503_v28 = vld [vmem:[#allocation2 + $0x5f0] sm:$0xff]  }
 0x230   : > { %2561 = vmatprep.mubr.bf16.mxu1 %v628_v30  ;;  %3153 = vmatprep.subr.bf16.mxu0 %v3449_v27  ;;  %v3501_v27 = vld [vmem:[#allocation2 + $0x570] sm:$0xff]  }
 0x231   : > { %3175 = vmatprep.subr.bf16.mxu1 %v3451_v29  ;;  %v3502_v29 = vld [vmem:[#allocation2 + $0x530] sm:$0xff]  }
 0x232   : > { %3154 = vmatpush3.bf16.msra.mxu0 %v3450_v31  ;;  %v3504_v30 = vld [vmem:[#allocation2 + $0x5b0] sm:$0xff]   ;;  %v3505_v31 = vld [vmem:[#allocation2 + $0x578] sm:$0xff]  }
 0x233   : > { %3176 = vmatpush3.bf16.msra.mxu1 %v3452_v32  ;;  %3155 = vmatprep.subr.bf16.mxu0 %v3453_v33  ;;  %v3507_v32 = vld [vmem:[#allocation2 + $0x5f8] sm:$0xff]  }
 0x234   : > { %3177 = vmatprep.subr.bf16.mxu1 %v3455_v34  ;;  %v3506_v33 = vld [vmem:[#allocation2 + $0x538] sm:$0xff]  }
 0x235   : > { %v3508_v34 = vld [vmem:[#allocation2 + $0x5b8] sm:$0xff]  }
 0x236   : > { %3156 = vmatpush3.bf16.msra.mxu0 %v3454_v35  ;;  %v599_v35 = vrot.slane %v3839_v15, 6 }
 0x237   : > { %3178 = vmatpush3.bf16.msra.mxu1 %v3456_v36  ;;  %3157 = vmatprep.subr.bf16.mxu0 %v3457_v17  ;;  %v604_v36 = vrot.slane %v3841_v19, 7 }
 0x238   : > { %3179 = vmatprep.subr.bf16.mxu1 %v3459_v37  ;;  %v629_v17 = vpack.c.bf16 %v599_v35, %v599_v35 }
 0x239   : > { %v631_v37 = vpack.c.bf16 %v604_v36, %v604_v36 }
 0x23a   : > { %3158 = vmatpush3.bf16.msra.mxu0 %v3458_v38 }
 0x23b   : > { %3180 = vmatpush3.bf16.msra.mxu1 %v3460_v39  ;;  %3159 = vmatprep.subr.bf16.mxu0 %v3461_v40  ;;  %v280_v39 = vld [vmem:[%s3927_s4] sm:$0x1] }
 0x23c   : > { %3181 = vmatprep.subr.bf16.mxu1 %v3463_v41 }
 0x23e   : > { %3160 = vmatpush3.bf16.msra.mxu0 %v3462_v42 }
 0x23f   : > { %3182 = vmatpush3.bf16.msra.mxu1 %v3464_v43  ;;  %3161 = vmatprep.subr.bf16.mxu0 %v3465_v44 }
 0x240   : > { %3183 = vmatprep.subr.bf16.mxu1 %v3467_v45 }
 0x242   : > { %3162 = vmatpush3.bf16.msra.mxu0 %v3466_v46 }
 0x243   : > { %3184 = vmatpush3.bf16.msra.mxu1 %v3468_v47  ;;  %3163 = vmatprep.subr.bf16.mxu0 %v3469_v48 }
 0x244   : > { %3185 = vmatprep.subr.bf16.mxu1 %v3471_v49 }
 0x246   : > { %3164 = vmatpush3.bf16.msra.mxu0 %v3470_v50 }
 0x247   : > { %3186 = vmatpush3.bf16.msra.mxu1 %v3472_v51  ;;  %3165 = vmatprep.subr.bf16.mxu0 %v3473_v52 }
 0x248   : > { %3187 = vmatprep.subr.bf16.mxu1 %v3475_v53 }
 0x24a   : > { %3166 = vmatpush3.bf16.msra.mxu0 %v3474_v54 }
 0x24b   : > { %3188 = vmatpush3.bf16.msra.mxu1 %v3476_v55  ;;  %3195 = vmatprep.subr.bf16.mxu0 %v3477_v57 }
 0x24c   : > { %3217 = vmatprep.subr.bf16.mxu1 %v3479_v59 }
 0x24d   : > { %2522 = vmatmul.mubr.bf16.vlgmr.msra.gmra.mrb[20].mxu0 %v625_v63 }
 0x24e   : > { %2562 = vmatmul.mubr.bf16.vlgmr.msra.gmra.mrb[20].mxu1 %v627_v1  ;;  %3196 = vmatpush3.bf16.msra.mxu0 %v3478_v61 }
 0x24f   : > { %2601 = vmatprep.mubr.bf16.mxu0 %v630_v3  ;;  %3218 = vmatpush3.bf16.msra.mxu1 %v3480_v0 }
 0x250   : > { %2641 = vmatprep.mubr.bf16.mxu1 %v632_v5  ;;  %3197 = vmatprep.subr.bf16.mxu0 %v3481_v2 }
 0x251   : > { %3219 = vmatprep.subr.bf16.mxu1 %v3483_v4 }
 0x252   : > { %3198 = vmatpush3.bf16.msra.mxu0 %v3482_v6 }
 0x253   : > { %3220 = vmatpush3.bf16.msra.mxu1 %v3484_v13  ;;  %3199 = vmatprep.subr.bf16.mxu0 %v3485_v7 }
 0x254   : > { %3221 = vmatprep.subr.bf16.mxu1 %v3487_v8 }
 0x256   : > { %3200 = vmatpush3.bf16.msra.mxu0 %v3486_v9 }
 0x257   : > { %3222 = vmatpush3.bf16.msra.mxu1 %v3488_v10  ;;  %3201 = vmatprep.subr.bf16.mxu0 %v3489_v11 }
 0x258   : > { %3223 = vmatprep.subr.bf16.mxu1 %v3491_v12 }
 0x25a   : > { %3202 = vmatpush3.bf16.msra.mxu0 %v3490_v14 }
 0x25b   : > { %3224 = vmatpush3.bf16.msra.mxu1 %v3492_v16  ;;  %3203 = vmatprep.subr.bf16.mxu0 %v3493_v18 }
 0x25c   : > { %3225 = vmatprep.subr.bf16.mxu1 %v3495_v20 }
 0x25e   : > { %3204 = vmatpush3.bf16.msra.mxu0 %v3494_v21 }
 0x25f   : > { %3226 = vmatpush3.bf16.msra.mxu1 %v3496_v22  ;;  %3205 = vmatprep.subr.bf16.mxu0 %v3497_v23 }
 0x260   : > { %3227 = vmatprep.subr.bf16.mxu1 %v3499_v24 }
 0x262   : > { %3206 = vmatpush3.bf16.msra.mxu0 %v3498_v25 }
 0x263   : > { %3228 = vmatpush3.bf16.msra.mxu1 %v3500_v26  ;;  %3207 = vmatprep.subr.bf16.mxu0 %v3501_v27 }
 0x264   : > { %3229 = vmatprep.subr.bf16.mxu1 %v3503_v28 }
 0x266   : > { %3208 = vmatpush3.bf16.msra.mxu0 %v3502_v29 }
 0x267   : > { %3230 = vmatpush3.bf16.msra.mxu1 %v3504_v30  ;;  %3209 = vmatprep.subr.bf16.mxu0 %v3505_v31 }
 0x268   : > { %3231 = vmatprep.subr.bf16.mxu1 %v3507_v32 }
 0x26a   : > { %3210 = vmatpush3.bf16.msra.mxu0 %v3506_v33 }
 0x26b   : > { %3232 = vmatpush3.bf16.msra.mxu1 %v3508_v34 }
 0x26d   : > { %2602 = vmatmul.mubr.bf16.vlgmr.msra.gmra.mrb[24].mxu0 %v629_v17 }
 0x26e   : > { %2642 = vmatmul.mubr.bf16.vlgmr.msra.gmra.mrb[24].mxu1 %v631_v37 }
 0x2a0   : > { %v2991_v38 = vpop.f32.mrb[4].mxu0 }
 0x2a1   : > { %v2992_v40 = vpop.f32.mrb[5].mxu0  ;;  %v3013_v41 = vpop.f32.mrb[4].mxu1 }
 0x2a2   : > { %v2993_v42 = vadd.f32 %v2992_v40, %v2991_v38  ;;  %v2994_v43 = vpop.f32.mrb[6].mxu0  ;;  %v3014_v44 = vpop.f32.mrb[5].mxu1 }
 0x2a3   : > { %v3015_v15 = vadd.f32 %v3014_v44, %v3013_v41  ;;  %v2995_v45 = vpop.f32.mrb[7].mxu0  ;;  %v3016_v46 = vpop.f32.mrb[6].mxu1 }
 0x2a4   : > { %v2204_v19 = vadd.f32 %v2993_v42, %v280_v39  ;;  %v3017_v47 = vpop.f32.mrb[7].mxu1 }
 0x2a6   : > { %v2244_v48 = vadd.f32 %v3015_v15, %v2204_v19 }
 0x2c0   : > { %v3035_v49 = vpop.f32.mrb[8].mxu0 }
 0x2c1   : > { %v3036_v50 = vpop.f32.mrb[9].mxu0  ;;  %v3057_v51 = vpop.f32.mrb[8].mxu1 }
 0x2c2   : > { %v3037_v52 = vadd.f32 %v3036_v50, %v3035_v49  ;;  %v3038_v53 = vpop.f32.mrb[10].mxu0  ;;  %v3058_v54 = vpop.f32.mrb[9].mxu1 }
 0x2c3   : > { %v3059_v55 = vadd.f32 %v3058_v54, %v3057_v51  ;;  %v3039_v56 = vpop.f32.mrb[11].mxu0  ;;  %v3060_v57 = vpop.f32.mrb[10].mxu1 }
 0x2c4   : > { %v2284_v58 = vadd.f32 %v3037_v52, %v2244_v48  ;;  %v3061_v59 = vpop.f32.mrb[11].mxu1 }
 0x2c6   : > { %v2324_v60 = vadd.f32 %v3059_v55, %v2284_v58 }
 0x2e0   : > { %v3079_v61 = vpop.f32.mrb[12].mxu0 }
 0x2e1   : > { %v3080_v62 = vpop.f32.mrb[13].mxu0  ;;  %v3101_v63 = vpop.f32.mrb[12].mxu1 }
 0x2e2   : > { %v3081_v0 = vadd.f32 %v3080_v62, %v3079_v61  ;;  %v3082_v1 = vpop.f32.mrb[14].mxu0  ;;  %v3102_v2 = vpop.f32.mrb[13].mxu1 }
 0x2e3   : > { %v3103_v3 = vadd.f32 %v3102_v2, %v3101_v63  ;;  %v3083_v4 = vpop.f32.mrb[15].mxu0  ;;  %v3104_v5 = vpop.f32.mrb[14].mxu1 }
 0x2e4   : > { %v2364_v6 = vadd.f32 %v3081_v0, %v2324_v60  ;;  %v3105_v13 = vpop.f32.mrb[15].mxu1 }
 0x2e6   : > { %v2404_v7 = vadd.f32 %v3103_v3, %v2364_v6 }
 0x300   : > { %v3123_v8 = vpop.f32.mrb[16].mxu0 }
 0x301   : > { %v3124_v9 = vpop.f32.mrb[17].mxu0  ;;  %v3145_v10 = vpop.f32.mrb[16].mxu1 }
 0x302   : > { %v3125_v11 = vadd.f32 %v3124_v9, %v3123_v8  ;;  %v3126_v12 = vpop.f32.mrb[18].mxu0  ;;  %v3146_v14 = vpop.f32.mrb[17].mxu1 }
 0x303   : > { %v3147_v16 = vadd.f32 %v3146_v14, %v3145_v10  ;;  %v3127_v18 = vpop.f32.mrb[19].mxu0  ;;  %v3148_v20 = vpop.f32.mrb[18].mxu1 }
 0x304   : > { %v2444_v21 = vadd.f32 %v3125_v11, %v2404_v7  ;;  %v3149_v22 = vpop.f32.mrb[19].mxu1 }
 0x306   : > { %v2484_v23 = vadd.f32 %v3147_v16, %v2444_v21 }
 0x320   : > { %v3167_v24 = vpop.f32.mrb[20].mxu0 }
 0x321   : > { %v3168_v25 = vpop.f32.mrb[21].mxu0  ;;  %v3189_v26 = vpop.f32.mrb[20].mxu1 }
 0x322   : > { %v3169_v27 = vadd.f32 %v3168_v25, %v3167_v24  ;;  %v3170_v28 = vpop.f32.mrb[22].mxu0  ;;  %v3190_v29 = vpop.f32.mrb[21].mxu1 }
 0x323   : > { %v3191_v30 = vadd.f32 %v3190_v29, %v3189_v26  ;;  %v3171_v31 = vpop.f32.mrb[23].mxu0  ;;  %v3192_v32 = vpop.f32.mrb[22].mxu1 }
 0x324   : > { %v2524_v33 = vadd.f32 %v3169_v27, %v2484_v23  ;;  %v3193_v34 = vpop.f32.mrb[23].mxu1 }
 0x326   : > { %v2564_v35 = vadd.f32 %v3191_v30, %v2524_v33 }
 0x340   : > { %v3211_v36 = vpop.f32.mrb[24].mxu0 }
 0x341   : > { %v3212_v17 = vpop.f32.mrb[25].mxu0  ;;  %v3233_v37 = vpop.f32.mrb[24].mxu1 }
 0x342   : > { %v3213_v38 = vadd.f32 %v3212_v17, %v3211_v36  ;;  %v3214_v39 = vpop.f32.mrb[26].mxu0  ;;  %v3234_v40 = vpop.f32.mrb[25].mxu1 }
 0x343   : > { %v3235_v41 = vadd.f32 %v3234_v40, %v3233_v37  ;;  %v3215_v42 = vpop.f32.mrb[27].mxu0  ;;  %v3236_v43 = vpop.f32.mrb[26].mxu1 }
 0x344   : > { %v2604_v44 = vadd.f32 %v3213_v38, %v2564_v35  ;;  %v3237_v15 = vpop.f32.mrb[27].mxu1 }
 0x346   : > { %v2644_v45 = vadd.f32 %v3235_v41, %v2604_v44 }
 0x348   : > { %2649 = vst [vmem:[%s266_s20] sm:$0x1] %v2644_v45 }
 0x349   : > { %3550 = shalt.err (!%p3547_p7)
}
 0x34a   : > { %s3551_s15 = scalar_lea.hbm %s3881_s10, 16  ;;  %s3555_s17 = scalar_lea.hbm %s3929_s6, 32 }
 0x34b   : > { %p3552_p8 = scmp.ne.s32.totalorder %s3881_s10, %s3551_s15  ;;  %p3556_p1 = scmp.lt.u32.totalorder %s3881_s10, %s3929_s6 }
 0x34c   : > { %p3557_p0 = scmp.lt.u32.totalorder %s3555_s17, %s3551_s15  ;;  %p3559_p6 = scmp.lt.u32.totalorder %s3551_s15, %s3881_s10 }
 0x34d   : > { %p3553_p11 = pnand %p3552_p8, %p3940_p9 }
 0x34e   : > { %p3558_p5 = por %p3557_p0, %p3556_p1 }
 0x34f   : > { %p3554_p13 = pneg %p3553_p11 }
 0x350   : > { %p3560_p10 = por %p3559_p6, %p3558_p5 }
 0x352   : > { %p3561_p12 = pnand %p3560_p10, %p3554_p13 }
 0x354   : > { %3564 = shalt.err (!%p3561_p12)
}
 0x355   : > { %3254 = dma.vmem_to_hbm [thread:$0]  (%p3940_p9), %s3883_s26, 16, %s3881_s10, %s2656_s11  }
 0x356 PF: > { %p3266_p2 = scmp.ge.s32.totalorder %s3603_s24, 2  ;;  %s2691_s20 = sand.u32 1, %s3591_s21  }
 0x357   : > { %p3941_p3 = scmp.ne.s32.totalorder %s3934_s8, 0  ;;  %s2692_s28 = scalar_lea.sflag [#allocation4], %s2691_s20 }
 0x359   : > { %p3261_p4 = pnand %p3266_p2, %p3941_p3 }
 0x35b   : > { %3586 = dma.done.wait (!%p3261_p4), %s2692_s28, 16  }
 0x35c   : > { %3588 = vsyncadd (!%p3261_p4), %s2692_s28, 4294967280  ;;  %p18_p7 = scmp.ge.s32.totalorder %s3681_s27, 4   ;;  %s3942_s21 = smov %s3595_s22 }
 0x35d   : > { %s3943_s22 = smov %s3599_s23  ;;  %s3944_s23 = smov %s3692_s30 }
 0x35e   : > { %s3945_s24 = smov %s3681_s27  ;;  %20 = sbr.rel (!%p18_p7) target bundleno = 4 (0x4), region = 92 }
 0x365   :  { %2696 = vsyncpa [#allocation3], 1 }
 0x366   :  { %2698 = vsyncpa [#allocation3 + $0x1], 1 }
 0x367   :  { %2699 = vsyncpa [#allocation4], 1 }
 0x368   :  { %2701 = vsyncpa [#allocation4 + $0x1], 1 }

</bundles_post_ra>
